<compile_context>
chip_gen: v6e
topology: v6e:2x2x1
jax: 0.10.0
libtpu: 0.0.40
codegen_flags: <defaults>
</compile_context>

<pallas_src>
import jax
import jax.numpy as jnp
from jax.experimental import pallas as pl
from jax.experimental.pallas import tpu as pltpu

# ---- model / problem sizes (small, consistent with the module) ----
BATCH = 2
SEQ = 8
INPUT_SIZE = 16
HIDDEN = 32           # d_model (must be divisible by nhead=2)
NHEAD = 2
HEAD_DIM = HIDDEN // NHEAD
FF = 2048             # PyTorch nn.TransformerEncoderLayer default dim_feedforward
EPS = 1e-5            # LayerNorm default eps

# ---- rows of the packed small-parameter slab (one DMA instead of 13) ----
ROW_B_EMB = 0
ROW_BQ = 1            # rows 1..2  per-head q bias (already scaled by 1/sqrt(hd))
ROW_BK = 3            # rows 3..4  per-head k bias
ROW_BV = 5            # rows 5..6  per-head v bias
ROW_B_OUT = 7
ROW_G1 = 8
ROW_BE1 = 9
ROW_B2 = 10
ROW_G2 = 11
ROW_BE2 = 12
ROW_WDEC = 13
ROW_BDEC = 14
N_ROWS = 16           # padded to a sublane multiple
LANES = 128


def _layer_norm(x, gamma, beta):
    mu = jnp.mean(x, axis=-1, keepdims=True)
    var = jnp.mean((x - mu) ** 2, axis=-1, keepdims=True)
    return (x - mu) * jax.lax.rsqrt(var + EPS) * gamma + beta


def transformer_kernel(x_ref, w_emb_ref, wqkv_ref, wout_ref,
                       w1_ref, b1_ref, w2_ref, sp_ref, out_ref):
    x = x_ref[...]                                                   # (B, S, I)
    sp = sp_ref[...]                                                 # (16, 128)

    def row(r, n):                                                   # (1, n), lane offset 0
        return sp[r:r + 1, :n]

    # ---- embedding: Linear(input_size, hidden) ----
    src = jnp.dot(x.reshape(BATCH * SEQ, INPUT_SIZE), w_emb_ref[...],
                  preferred_element_type=jnp.float32) + row(ROW_B_EMB, HIDDEN)
    # src: (B*S, H), kept 2D throughout (attention works per batch below)

    # ---- multi-head self-attention (nhead = 2), over the seq axis ----
    # Per-head Q/K/V dots (weights pre-split host-side, scale folded into Wq):
    # every head's tensors land at lane offset 0 -> no lane slicing/relayout.
    attn = None
    for hh in range(NHEAD):
        qh = (jnp.dot(src, wqkv_ref[3 * hh + 0],
                      preferred_element_type=jnp.float32)
              + row(ROW_BQ + hh, HEAD_DIM)).reshape(BATCH, SEQ, HEAD_DIM)
        kh = (jnp.dot(src, wqkv_ref[3 * hh + 1],
                      preferred_element_type=jnp.float32)
              + row(ROW_BK + hh, HEAD_DIM)).reshape(BATCH, SEQ, HEAD_DIM)
        vh = (jnp.dot(src, wqkv_ref[3 * hh + 2],
                      preferred_element_type=jnp.float32)
              + row(ROW_BV + hh, HEAD_DIM)).reshape(BATCH, SEQ, HEAD_DIM)

        s = jnp.einsum('bqd,bkd->bqk', qh, kh,
                       preferred_element_type=jnp.float32)           # (B, S, S)
        s = s - jnp.max(s, axis=-1, keepdims=True)
        e = jnp.exp(s)
        p = e * pl.reciprocal(jnp.sum(e, axis=-1, keepdims=True), approx=True)
        oh = jnp.einsum('bqk,bkd->bqd', p, vh,
                        preferred_element_type=jnp.float32)          # (B, S, hd)

        # per-head output projection, accumulated (no head concat)
        contrib = jnp.dot(oh.reshape(BATCH * SEQ, HEAD_DIM), wout_ref[hh],
                          preferred_element_type=jnp.float32)        # (B*S, H)
        attn = contrib if attn is None else attn + contrib
    attn = attn + row(ROW_B_OUT, HIDDEN)

    # post-norm residual 1
    x1 = _layer_norm(src + attn, row(ROW_G1, HIDDEN), row(ROW_BE1, HIDDEN))

    # ---- feed-forward: Linear(H, FF) -> relu -> Linear(FF, H) ----
    # bf16 weights / activations on the MXU, f32 accumulation.
    ff = jnp.dot(x1.astype(jnp.bfloat16), w1_ref[...],
                 preferred_element_type=jnp.float32) + b1_ref[...]
    ff = jnp.maximum(ff, 0.0)
    ff = jnp.dot(ff.astype(jnp.bfloat16), w2_ref[...],
                 preferred_element_type=jnp.float32) + row(ROW_B2, HIDDEN)

    # post-norm residual 2
    x2 = _layer_norm(x1 + ff, row(ROW_G2, HIDDEN), row(ROW_BE2, HIDDEN))

    # ---- take last sequence position, decode: Linear(hidden, 1) ----
    last = x2.reshape(BATCH, SEQ, HIDDEN)[:, SEQ - 1, :]             # (B, H)
    # VPU multiply + lane reduce instead of an N=1 MXU matmul.
    w_dec = row(ROW_WDEC, HIDDEN)                                    # (1, H)
    b_dec = sp[ROW_BDEC:ROW_BDEC + 1, 0:1]                           # (1, 1)
    out_ref[...] = jnp.sum(last * w_dec, axis=-1, keepdims=True) + b_dec


def init_params(key):
    """Deterministic, PyTorch-Linear-style uniform init (W stored as (out, in))."""
    def linear(k, fan_out, fan_in):
        kw, kb = jax.random.split(k)
        bound = 1.0 / (fan_in ** 0.5)
        w = jax.random.uniform(kw, (fan_out, fan_in), jnp.float32, -bound, bound)
        b = jax.random.uniform(kb, (fan_out,), jnp.float32, -bound, bound)
        return w, b

    keys = jax.random.split(key, 6)
    w_emb, b_emb = linear(keys[0], HIDDEN, INPUT_SIZE)        # embedding
    w_in,  b_in  = linear(keys[1], 3 * HIDDEN, HIDDEN)        # MHA in_proj
    w_out, b_out = linear(keys[2], HIDDEN, HIDDEN)            # MHA out_proj
    w1,    b1    = linear(keys[3], FF, HIDDEN)                # encoder linear1
    w2,    b2    = linear(keys[4], HIDDEN, FF)                # encoder linear2
    w_dec, b_dec = linear(keys[5], 1, HIDDEN)                 # decoder
    return dict(
        w_emb=w_emb, b_emb=b_emb,
        w_in=w_in, b_in=b_in,
        w_out=w_out, b_out=b_out,
        g1=jnp.ones((HIDDEN,), jnp.float32), be1=jnp.zeros((HIDDEN,), jnp.float32),
        w1=w1, b1=b1, w2=w2, b2=b2,
        g2=jnp.ones((HIDDEN,), jnp.float32), be2=jnp.zeros((HIDDEN,), jnp.float32),
        w_dec=w_dec, b_dec=b_dec,
    )


def prepare_params(p):
    """One-time host-side layout prep; the per-call forward does no transposes."""
    scale = 1.0 / (HEAD_DIM ** 0.5)

    w_emb = jnp.asarray(p["w_emb"], jnp.float32).T                    # (I, H)

    w_in = jnp.asarray(p["w_in"], jnp.float32)                        # (3H, H), (out,in)
    b_in = jnp.asarray(p["b_in"], jnp.float32)                        # (3H,)
    wq, wk, wv = w_in[:HIDDEN], w_in[HIDDEN:2 * HIDDEN], w_in[2 * HIDDEN:]
    bq, bk, bv = b_in[:HIDDEN], b_in[HIDDEN:2 * HIDDEN], b_in[2 * HIDDEN:]

    # Per-head (in, head_dim) projections; softmax scale folded into Wq/bq.
    blocks = []
    for h in range(NHEAD):
        lo, hi = h * HEAD_DIM, (h + 1) * HEAD_DIM
        blocks.append(wq[lo:hi, :].T * scale)
        blocks.append(wk[lo:hi, :].T)
        blocks.append(wv[lo:hi, :].T)
    wqkv = jnp.stack(blocks)                                          # (3*NHEAD, H, hd)

    w_out = jnp.asarray(p["w_out"], jnp.float32)                      # (H, H), (out,in)
    wout_h = jnp.stack([w_out[:, h * HEAD_DIM:(h + 1) * HEAD_DIM].T
                        for h in range(NHEAD)])                       # (NHEAD, hd, H)

    # FF weights: dominant HBM traffic -> bf16 (f32 accumulation in-kernel).
    w1 = jnp.asarray(p["w1"], jnp.float32).T.astype(jnp.bfloat16)     # (H, FF)
    b1 = jnp.asarray(p["b1"], jnp.float32).reshape(1, FF)
    w2 = jnp.asarray(p["w2"], jnp.float32).T.astype(jnp.bfloat16)     # (FF, H)

    # Pack all small vectors into one (16, 128) f32 slab (one DMA).
    rows = [jnp.zeros((LANES,), jnp.float32)] * N_ROWS

    def put(r, v):
        v = jnp.asarray(v, jnp.float32).reshape(-1)
        rows[r] = jnp.pad(v, (0, LANES - v.shape[0]))

    put(ROW_B_EMB, p["b_emb"])
    for h in range(NHEAD):
        lo, hi = h * HEAD_DIM, (h + 1) * HEAD_DIM
        put(ROW_BQ + h, bq[lo:hi] * scale)
        put(ROW_BK + h, bk[lo:hi])
        put(ROW_BV + h, bv[lo:hi])
    put(ROW_B_OUT, p["b_out"])
    put(ROW_G1, p["g1"]); put(ROW_BE1, p["be1"])
    put(ROW_B2, p["b2"])
    put(ROW_G2, p["g2"]); put(ROW_BE2, p["be2"])
    put(ROW_WDEC, jnp.asarray(p["w_dec"]).reshape(-1))
    put(ROW_BDEC, p["b_dec"])
    sp = jnp.stack(rows)                                              # (16, 128)

    return (w_emb, wqkv, wout_h, w1, b1, w2, sp)


@jax.jit
def transformer_forward(x, w_emb, wqkv, wout_h, w1, b1, w2, sp):
    vmem = pl.BlockSpec(memory_space=pltpu.MemorySpace.VMEM)
    return pl.pallas_call(
        transformer_kernel,
        out_shape=jax.ShapeDtypeStruct((BATCH, 1), jnp.float32),
        # whole problem (<1 MiB) fits VMEM on v5e/v6e/v7x -> single-shot, no grid
        in_specs=[vmem] * 8,
        out_specs=vmem,
    )(x, w_emb, wqkv, wout_h, w1, b1, w2, sp)


if __name__ == "__main__":
    key = jax.random.PRNGKey(0)
    kx, kp = jax.random.split(key)
    x = jax.random.normal(kx, (BATCH, SEQ, INPUT_SIZE), jnp.float32)
    params = init_params(kp)
    kernel_args = prepare_params(params)   # one-time layout prep, not per call

    out = transformer_forward(x, *kernel_args)
    jax.block_until_ready(out)
    assert out.shape == (BATCH, 1) and out.dtype == jnp.float32
    assert bool(jnp.all(jnp.isfinite(out)))
    print("KERNEL_OK")
</pallas_src>

<mosaic_0001>
module attributes {stable_mosaic.version = 11 : i64} {
  func.func @transformer_kernel(%arg0: memref<2x8x16xf32, #tpu.memory_space<vmem>>, %arg1: memref<16x32xf32, #tpu.memory_space<vmem>>, %arg2: memref<6x32x16xf32, #tpu.memory_space<vmem>>, %arg3: memref<2x16x32xf32, #tpu.memory_space<vmem>>, %arg4: memref<32x2048xbf16, #tpu.memory_space<vmem>>, %arg5: memref<1x2048xf32, #tpu.memory_space<vmem>>, %arg6: memref<2048x32xbf16, #tpu.memory_space<vmem>>, %arg7: memref<16x128xf32, #tpu.memory_space<vmem>>, %arg8: memref<2x1xf32, #tpu.memory_space<vmem>>) attributes {dimension_semantics = [], scalar_prefetch = 0 : i64, scratch_operands = 0 : i64, tpu.core_type = #tpu.core_type<tc>} {
    %c0 = arith.constant 0 : index
    %c0_0 = arith.constant 0 : index
    %c0_1 = arith.constant 0 : index
    %0 = vector.load %arg0[%c0, %c0_0, %c0_1] : memref<2x8x16xf32, #tpu.memory_space<vmem>>, vector<2x8x16xf32>
    %c0_2 = arith.constant 0 : index
    %c0_3 = arith.constant 0 : index
    %1 = vector.load %arg7[%c0_2, %c0_3] : memref<16x128xf32, #tpu.memory_space<vmem>>, vector<16x128xf32>
    %2 = vector.shape_cast %0 : vector<2x8x16xf32> to vector<16x16xf32>
    %c0_4 = arith.constant 0 : index
    %c0_5 = arith.constant 0 : index
    %3 = vector.load %arg1[%c0_4, %c0_5] : memref<16x32xf32, #tpu.memory_space<vmem>>, vector<16x32xf32>
    %cst = arith.constant dense<0.000000e+00> : vector<16x32xf32>
    %4 = tpu.matmul %2, %3, %cst {dimension_numbers = #tpu.dot_dimension_numbers<[1], [0], [0], [1], [0, 0, 1, 1], [], []>} : vector<16x16xf32>, vector<16x32xf32>, vector<16x32xf32> -> vector<16x32xf32>
    %5 = vector.extract_strided_slice %1 {offsets = [0, 0], sizes = [1, 32], strides = [1, 1]} : vector<16x128xf32> to vector<1x32xf32>
    %6 = vector.broadcast %5 : vector<1x32xf32> to vector<16x32xf32>
    %7 = arith.addf %4, %6 : vector<16x32xf32>
    %c0_6 = arith.constant 0 : index
    %c0_7 = arith.constant 0 : index
    %c0_8 = arith.constant 0 : index
    %8 = vector.load %arg2[%c0_6, %c0_7, %c0_8] : memref<6x32x16xf32, #tpu.memory_space<vmem>>, vector<1x32x16xf32>
    %9 = vector.shape_cast %8 : vector<1x32x16xf32> to vector<32x16xf32>
    %cst_9 = arith.constant dense<0.000000e+00> : vector<16x16xf32>
    %10 = tpu.matmul %7, %9, %cst_9 {dimension_numbers = #tpu.dot_dimension_numbers<[1], [0], [0], [1], [0, 0, 1, 1], [], []>} : vector<16x32xf32>, vector<32x16xf32>, vector<16x16xf32> -> vector<16x16xf32>
    %11 = vector.extract_strided_slice %1 {offsets = [1, 0], sizes = [1, 16], strides = [1, 1]} : vector<16x128xf32> to vector<1x16xf32>
    %12 = vector.broadcast %11 : vector<1x16xf32> to vector<16x16xf32>
    %13 = arith.addf %10, %12 : vector<16x16xf32>
    %14 = vector.shape_cast %13 : vector<16x16xf32> to vector<2x8x16xf32>
    %c1 = arith.constant 1 : index
    %c0_10 = arith.constant 0 : index
    %c0_11 = arith.constant 0 : index
    %15 = vector.load %arg2[%c1, %c0_10, %c0_11] : memref<6x32x16xf32, #tpu.memory_space<vmem>>, vector<1x32x16xf32>
    %16 = vector.shape_cast %15 : vector<1x32x16xf32> to vector<32x16xf32>
    %cst_12 = arith.constant dense<0.000000e+00> : vector<16x16xf32>
    %17 = tpu.matmul %7, %16, %cst_12 {dimension_numbers = #tpu.dot_dimension_numbers<[1], [0], [0], [1], [0, 0, 1, 1], [], []>} : vector<16x32xf32>, vector<32x16xf32>, vector<16x16xf32> -> vector<16x16xf32>
    %18 = vector.extract_strided_slice %1 {offsets = [3, 0], sizes = [1, 16], strides = [1, 1]} : vector<16x128xf32> to vector<1x16xf32>
    %19 = vector.broadcast %18 : vector<1x16xf32> to vector<16x16xf32>
    %20 = arith.addf %17, %19 : vector<16x16xf32>
    %21 = vector.shape_cast %20 : vector<16x16xf32> to vector<2x8x16xf32>
    %c2 = arith.constant 2 : index
    %c0_13 = arith.constant 0 : index
    %c0_14 = arith.constant 0 : index
    %22 = vector.load %arg2[%c2, %c0_13, %c0_14] : memref<6x32x16xf32, #tpu.memory_space<vmem>>, vector<1x32x16xf32>
    %23 = vector.shape_cast %22 : vector<1x32x16xf32> to vector<32x16xf32>
    %cst_15 = arith.constant dense<0.000000e+00> : vector<16x16xf32>
    %24 = tpu.matmul %7, %23, %cst_15 {dimension_numbers = #tpu.dot_dimension_numbers<[1], [0], [0], [1], [0, 0, 1, 1], [], []>} : vector<16x32xf32>, vector<32x16xf32>, vector<16x16xf32> -> vector<16x16xf32>
    %25 = vector.extract_strided_slice %1 {offsets = [5, 0], sizes = [1, 16], strides = [1, 1]} : vector<16x128xf32> to vector<1x16xf32>
    %26 = vector.broadcast %25 : vector<1x16xf32> to vector<16x16xf32>
    %27 = arith.addf %24, %26 : vector<16x16xf32>
    %28 = vector.shape_cast %27 : vector<16x16xf32> to vector<2x8x16xf32>
    "tpu.trace_start"() <{level = 10 : i32, message = "bqd,bkd->bqk"}> : () -> ()
    %cst_16 = arith.constant dense<0.000000e+00> : vector<2x8x8xf32>
    %29 = tpu.matmul %14, %21, %cst_16 {dimension_numbers = #tpu.dot_dimension_numbers<[2], [2], [1], [1], [0, 0, 0, 1, 1, 1], [0], [0]>} : vector<2x8x16xf32>, vector<2x8x16xf32>, vector<2x8x8xf32> -> vector<2x8x8xf32>
    "tpu.trace_stop"() : () -> ()
    %cst_17 = arith.constant dense<0xFF800000> : vector<2x8xf32>
    %30 = vector.multi_reduction <maximumf>, %29, %cst_17 [2] : vector<2x8x8xf32> to vector<2x8xf32>
    %31 = vector.shape_cast %30 : vector<2x8xf32> to vector<2x8x1xf32>
    %32 = vector.broadcast %31 : vector<2x8x1xf32> to vector<2x8x8xf32>
    %33 = arith.subf %29, %32 : vector<2x8x8xf32>
    %34 = math.exp %33 : vector<2x8x8xf32>
    %cst_18 = arith.constant dense<0.000000e+00> : vector<2x8xf32>
    %35 = vector.multi_reduction <add>, %34, %cst_18 [2] : vector<2x8x8xf32> to vector<2x8xf32>
    %36 = vector.shape_cast %35 : vector<2x8xf32> to vector<2x8x1xf32>
    %37 = tpu.reciprocal %36 {approx = true} : vector<2x8x1xf32> -> vector<2x8x1xf32>
    %38 = vector.broadcast %37 : vector<2x8x1xf32> to vector<2x8x8xf32>
    %39 = arith.mulf %34, %38 : vector<2x8x8xf32>
    "tpu.trace_start"() <{level = 10 : i32, message = "bqk,bkd->bqd"}> : () -> ()
    %cst_19 = arith.constant dense<0.000000e+00> : vector<2x8x16xf32>
    %40 = tpu.matmul %39, %28, %cst_19 {dimension_numbers = #tpu.dot_dimension_numbers<[2], [1], [1], [2], [0, 0, 0, 1, 1, 2], [0], [0]>} : vector<2x8x8xf32>, vector<2x8x16xf32>, vector<2x8x16xf32> -> vector<2x8x16xf32>
    "tpu.trace_stop"() : () -> ()
    %41 = vector.shape_cast %40 : vector<2x8x16xf32> to vector<16x16xf32>
    %c0_20 = arith.constant 0 : index
    %c0_21 = arith.constant 0 : index
    %c0_22 = arith.constant 0 : index
    %42 = vector.load %arg3[%c0_20, %c0_21, %c0_22] : memref<2x16x32xf32, #tpu.memory_space<vmem>>, vector<1x16x32xf32>
    %43 = vector.shape_cast %42 : vector<1x16x32xf32> to vector<16x32xf32>
    %cst_23 = arith.constant dense<0.000000e+00> : vector<16x32xf32>
    %44 = tpu.matmul %41, %43, %cst_23 {dimension_numbers = #tpu.dot_dimension_numbers<[1], [0], [0], [1], [0, 0, 1, 1], [], []>} : vector<16x16xf32>, vector<16x32xf32>, vector<16x32xf32> -> vector<16x32xf32>
    %c3 = arith.constant 3 : index
    %c0_24 = arith.constant 0 : index
    %c0_25 = arith.constant 0 : index
    %45 = vector.load %arg2[%c3, %c0_24, %c0_25] : memref<6x32x16xf32, #tpu.memory_space<vmem>>, vector<1x32x16xf32>
    %46 = vector.shape_cast %45 : vector<1x32x16xf32> to vector<32x16xf32>
    %cst_26 = arith.constant dense<0.000000e+00> : vector<16x16xf32>
    %47 = tpu.matmul %7, %46, %cst_26 {dimension_numbers = #tpu.dot_dimension_numbers<[1], [0], [0], [1], [0, 0, 1, 1], [], []>} : vector<16x32xf32>, vector<32x16xf32>, vector<16x16xf32> -> vector<16x16xf32>
    %48 = vector.extract_strided_slice %1 {offsets = [2, 0], sizes = [1, 16], strides = [1, 1]} : vector<16x128xf32> to vector<1x16xf32>
    %49 = vector.broadcast %48 : vector<1x16xf32> to vector<16x16xf32>
    %50 = arith.addf %47, %49 : vector<16x16xf32>
    %51 = vector.shape_cast %50 : vector<16x16xf32> to vector<2x8x16xf32>
    %c4 = arith.constant 4 : index
    %c0_27 = arith.constant 0 : index
    %c0_28 = arith.constant 0 : index
    %52 = vector.load %arg2[%c4, %c0_27, %c0_28] : memref<6x32x16xf32, #tpu.memory_space<vmem>>, vector<1x32x16xf32>
    %53 = vector.shape_cast %52 : vector<1x32x16xf32> to vector<32x16xf32>
    %cst_29 = arith.constant dense<0.000000e+00> : vector<16x16xf32>
    %54 = tpu.matmul %7, %53, %cst_29 {dimension_numbers = #tpu.dot_dimension_numbers<[1], [0], [0], [1], [0, 0, 1, 1], [], []>} : vector<16x32xf32>, vector<32x16xf32>, vector<16x16xf32> -> vector<16x16xf32>
    %55 = vector.extract_strided_slice %1 {offsets = [4, 0], sizes = [1, 16], strides = [1, 1]} : vector<16x128xf32> to vector<1x16xf32>
    %56 = vector.broadcast %55 : vector<1x16xf32> to vector<16x16xf32>
    %57 = arith.addf %54, %56 : vector<16x16xf32>
    %58 = vector.shape_cast %57 : vector<16x16xf32> to vector<2x8x16xf32>
    %c5 = arith.constant 5 : index
    %c0_30 = arith.constant 0 : index
    %c0_31 = arith.constant 0 : index
    %59 = vector.load %arg2[%c5, %c0_30, %c0_31] : memref<6x32x16xf32, #tpu.memory_space<vmem>>, vector<1x32x16xf32>
    %60 = vector.shape_cast %59 : vector<1x32x16xf32> to vector<32x16xf32>
    %cst_32 = arith.constant dense<0.000000e+00> : vector<16x16xf32>
    %61 = tpu.matmul %7, %60, %cst_32 {dimension_numbers = #tpu.dot_dimension_numbers<[1], [0], [0], [1], [0, 0, 1, 1], [], []>} : vector<16x32xf32>, vector<32x16xf32>, vector<16x16xf32> -> vector<16x16xf32>
    %62 = vector.extract_strided_slice %1 {offsets = [6, 0], sizes = [1, 16], strides = [1, 1]} : vector<16x128xf32> to vector<1x16xf32>
    %63 = vector.broadcast %62 : vector<1x16xf32> to vector<16x16xf32>
    %64 = arith.addf %61, %63 : vector<16x16xf32>
    %65 = vector.shape_cast %64 : vector<16x16xf32> to vector<2x8x16xf32>
    "tpu.trace_start"() <{level = 10 : i32, message = "bqd,bkd->bqk"}> : () -> ()
    %cst_33 = arith.constant dense<0.000000e+00> : vector<2x8x8xf32>
    %66 = tpu.matmul %51, %58, %cst_33 {dimension_numbers = #tpu.dot_dimension_numbers<[2], [2], [1], [1], [0, 0, 0, 1, 1, 1], [0], [0]>} : vector<2x8x16xf32>, vector<2x8x16xf32>, vector<2x8x8xf32> -> vector<2x8x8xf32>
    "tpu.trace_stop"() : () -> ()
    %cst_34 = arith.constant dense<0xFF800000> : vector<2x8xf32>
    %67 = vector.multi_reduction <maximumf>, %66, %cst_34 [2] : vector<2x8x8xf32> to vector<2x8xf32>
    %68 = vector.shape_cast %67 : vector<2x8xf32> to vector<2x8x1xf32>
    %69 = vector.broadcast %68 : vector<2x8x1xf32> to vector<2x8x8xf32>
    %70 = arith.subf %66, %69 : vector<2x8x8xf32>
    %71 = math.exp %70 : vector<2x8x8xf32>
    %cst_35 = arith.constant dense<0.000000e+00> : vector<2x8xf32>
    %72 = vector.multi_reduction <add>, %71, %cst_35 [2] : vector<2x8x8xf32> to vector<2x8xf32>
    %73 = vector.shape_cast %72 : vector<2x8xf32> to vector<2x8x1xf32>
    %74 = tpu.reciprocal %73 {approx = true} : vector<2x8x1xf32> -> vector<2x8x1xf32>
    %75 = vector.broadcast %74 : vector<2x8x1xf32> to vector<2x8x8xf32>
    %76 = arith.mulf %71, %75 : vector<2x8x8xf32>
    "tpu.trace_start"() <{level = 10 : i32, message = "bqk,bkd->bqd"}> : () -> ()
    %cst_36 = arith.constant dense<0.000000e+00> : vector<2x8x16xf32>
    %77 = tpu.matmul %76, %65, %cst_36 {dimension_numbers = #tpu.dot_dimension_numbers<[2], [1], [1], [2], [0, 0, 0, 1, 1, 2], [0], [0]>} : vector<2x8x8xf32>, vector<2x8x16xf32>, vector<2x8x16xf32> -> vector<2x8x16xf32>
    "tpu.trace_stop"() : () -> ()
    %78 = vector.shape_cast %77 : vector<2x8x16xf32> to vector<16x16xf32>
    %c1_37 = arith.constant 1 : index
    %c0_38 = arith.constant 0 : index
    %c0_39 = arith.constant 0 : index
    %79 = vector.load %arg3[%c1_37, %c0_38, %c0_39] : memref<2x16x32xf32, #tpu.memory_space<vmem>>, vector<1x16x32xf32>
    %80 = vector.shape_cast %79 : vector<1x16x32xf32> to vector<16x32xf32>
    %cst_40 = arith.constant dense<0.000000e+00> : vector<16x32xf32>
    %81 = tpu.matmul %78, %80, %cst_40 {dimension_numbers = #tpu.dot_dimension_numbers<[1], [0], [0], [1], [0, 0, 1, 1], [], []>} : vector<16x16xf32>, vector<16x32xf32>, vector<16x32xf32> -> vector<16x32xf32>
    %82 = arith.addf %44, %81 : vector<16x32xf32>
    %83 = vector.extract_strided_slice %1 {offsets = [7, 0], sizes = [1, 32], strides = [1, 1]} : vector<16x128xf32> to vector<1x32xf32>
    %84 = vector.broadcast %83 : vector<1x32xf32> to vector<16x32xf32>
    %85 = arith.addf %82, %84 : vector<16x32xf32>
    %86 = arith.addf %7, %85 : vector<16x32xf32>
    %87 = vector.extract_strided_slice %1 {offsets = [8, 0], sizes = [1, 32], strides = [1, 1]} : vector<16x128xf32> to vector<1x32xf32>
    %88 = vector.extract_strided_slice %1 {offsets = [9, 0], sizes = [1, 32], strides = [1, 1]} : vector<16x128xf32> to vector<1x32xf32>
    %cst_41 = arith.constant dense<0.000000e+00> : vector<16xf32>
    %89 = vector.multi_reduction <add>, %86, %cst_41 [1] : vector<16x32xf32> to vector<16xf32>
    %90 = vector.shape_cast %89 : vector<16xf32> to vector<16x1xf32>
    %cst_42 = arith.constant 3.200000e+01 : f32
    %91 = vector.broadcast %cst_42 : f32 to vector<16x1xf32>
    %92 = arith.divf %90, %91 : vector<16x1xf32>
    %93 = vector.broadcast %92 : vector<16x1xf32> to vector<16x32xf32>
    %94 = arith.subf %86, %93 : vector<16x32xf32>
    %95 = arith.mulf %94, %94 : vector<16x32xf32>
    %cst_43 = arith.constant dense<0.000000e+00> : vector<16xf32>
    %96 = vector.multi_reduction <add>, %95, %cst_43 [1] : vector<16x32xf32> to vector<16xf32>
    %97 = vector.shape_cast %96 : vector<16xf32> to vector<16x1xf32>
    %cst_44 = arith.constant 3.200000e+01 : f32
    %98 = vector.broadcast %cst_44 : f32 to vector<16x1xf32>
    %99 = arith.divf %97, %98 : vector<16x1xf32>
    %100 = vector.broadcast %92 : vector<16x1xf32> to vector<16x32xf32>
    %101 = arith.subf %86, %100 : vector<16x32xf32>
    %cst_45 = arith.constant 9.99999974E-6 : f32
    %102 = vector.broadcast %cst_45 : f32 to vector<16x1xf32>
    %103 = arith.addf %99, %102 : vector<16x1xf32>
    %104 = math.rsqrt %103 : vector<16x1xf32>
    %105 = vector.broadcast %104 : vector<16x1xf32> to vector<16x32xf32>
    %106 = arith.mulf %101, %105 : vector<16x32xf32>
    %107 = vector.broadcast %87 : vector<1x32xf32> to vector<16x32xf32>
    %108 = arith.mulf %106, %107 : vector<16x32xf32>
    %109 = vector.broadcast %88 : vector<1x32xf32> to vector<16x32xf32>
    %110 = arith.addf %108, %109 : vector<16x32xf32>
    %111 = arith.truncf %110 : vector<16x32xf32> to vector<16x32xbf16>
    %c0_46 = arith.constant 0 : index
    %c0_47 = arith.constant 0 : index
    %112 = vector.load %arg4[%c0_46, %c0_47] : memref<32x2048xbf16, #tpu.memory_space<vmem>>, vector<32x2048xbf16>
    %cst_48 = arith.constant dense<0.000000e+00> : vector<16x2048xf32>
    %113 = tpu.matmul %111, %112, %cst_48 {dimension_numbers = #tpu.dot_dimension_numbers<[1], [0], [0], [1], [0, 0, 1, 1], [], []>} : vector<16x32xbf16>, vector<32x2048xbf16>, vector<16x2048xf32> -> vector<16x2048xf32>
    %c0_49 = arith.constant 0 : index
    %c0_50 = arith.constant 0 : index
    %114 = vector.load %arg5[%c0_49, %c0_50] : memref<1x2048xf32, #tpu.memory_space<vmem>>, vector<1x2048xf32>
    %115 = vector.broadcast %114 : vector<1x2048xf32> to vector<16x2048xf32>
    %116 = arith.addf %113, %115 : vector<16x2048xf32>
    %cst_51 = arith.constant 0.000000e+00 : f32
    %117 = vector.broadcast %cst_51 : f32 to vector<16x2048xf32>
    %118 = arith.maximumf %116, %117 : vector<16x2048xf32>
    %119 = arith.truncf %118 : vector<16x2048xf32> to vector<16x2048xbf16>
    %c0_52 = arith.constant 0 : index
    %c0_53 = arith.constant 0 : index
    %120 = vector.load %arg6[%c0_52, %c0_53] : memref<2048x32xbf16, #tpu.memory_space<vmem>>, vector<2048x32xbf16>
    %cst_54 = arith.constant dense<0.000000e+00> : vector<16x32xf32>
    %121 = tpu.matmul %119, %120, %cst_54 {dimension_numbers = #tpu.dot_dimension_numbers<[1], [0], [0], [1], [0, 0, 1, 1], [], []>} : vector<16x2048xbf16>, vector<2048x32xbf16>, vector<16x32xf32> -> vector<16x32xf32>
    %122 = vector.extract_strided_slice %1 {offsets = [10, 0], sizes = [1, 32], strides = [1, 1]} : vector<16x128xf32> to vector<1x32xf32>
    %123 = vector.broadcast %122 : vector<1x32xf32> to vector<16x32xf32>
    %124 = arith.addf %121, %123 : vector<16x32xf32>
    %125 = arith.addf %110, %124 : vector<16x32xf32>
    %126 = vector.extract_strided_slice %1 {offsets = [11, 0], sizes = [1, 32], strides = [1, 1]} : vector<16x128xf32> to vector<1x32xf32>
    %127 = vector.extract_strided_slice %1 {offsets = [12, 0], sizes = [1, 32], strides = [1, 1]} : vector<16x128xf32> to vector<1x32xf32>
    %cst_55 = arith.constant dense<0.000000e+00> : vector<16xf32>
    %128 = vector.multi_reduction <add>, %125, %cst_55 [1] : vector<16x32xf32> to vector<16xf32>
    %129 = vector.shape_cast %128 : vector<16xf32> to vector<16x1xf32>
    %cst_56 = arith.constant 3.200000e+01 : f32
    %130 = vector.broadcast %cst_56 : f32 to vector<16x1xf32>
    %131 = arith.divf %129, %130 : vector<16x1xf32>
    %132 = vector.broadcast %131 : vector<16x1xf32> to vector<16x32xf32>
    %133 = arith.subf %125, %132 : vector<16x32xf32>
    %134 = arith.mulf %133, %133 : vector<16x32xf32>
    %cst_57 = arith.constant dense<0.000000e+00> : vector<16xf32>
    %135 = vector.multi_reduction <add>, %134, %cst_57 [1] : vector<16x32xf32> to vector<16xf32>
    %136 = vector.shape_cast %135 : vector<16xf32> to vector<16x1xf32>
    %cst_58 = arith.constant 3.200000e+01 : f32
    %137 = vector.broadcast %cst_58 : f32 to vector<16x1xf32>
    %138 = arith.divf %136, %137 : vector<16x1xf32>
    %139 = vector.broadcast %131 : vector<16x1xf32> to vector<16x32xf32>
    %140 = arith.subf %125, %139 : vector<16x32xf32>
    %cst_59 = arith.constant 9.99999974E-6 : f32
    %141 = vector.broadcast %cst_59 : f32 to vector<16x1xf32>
    %142 = arith.addf %138, %141 : vector<16x1xf32>
    %143 = math.rsqrt %142 : vector<16x1xf32>
    %144 = vector.broadcast %143 : vector<16x1xf32> to vector<16x32xf32>
    %145 = arith.mulf %140, %144 : vector<16x32xf32>
    %146 = vector.broadcast %126 : vector<1x32xf32> to vector<16x32xf32>
    %147 = arith.mulf %145, %146 : vector<16x32xf32>
    %148 = vector.broadcast %127 : vector<1x32xf32> to vector<16x32xf32>
    %149 = arith.addf %147, %148 : vector<16x32xf32>
    %150 = vector.shape_cast %149 : vector<16x32xf32> to vector<2x8x32xf32>
    %151 = vector.extract_strided_slice %150 {offsets = [0, 7, 0], sizes = [2, 1, 32], strides = [1, 1, 1]} : vector<2x8x32xf32> to vector<2x1x32xf32>
    %152 = vector.shape_cast %151 : vector<2x1x32xf32> to vector<2x32xf32>
    %153 = vector.extract_strided_slice %1 {offsets = [13, 0], sizes = [1, 32], strides = [1, 1]} : vector<16x128xf32> to vector<1x32xf32>
    %154 = vector.extract_strided_slice %1 {offsets = [14, 0], sizes = [1, 1], strides = [1, 1]} : vector<16x128xf32> to vector<1x1xf32>
    %155 = vector.broadcast %153 : vector<1x32xf32> to vector<2x32xf32>
    %156 = arith.mulf %152, %155 : vector<2x32xf32>
    %cst_60 = arith.constant dense<0.000000e+00> : vector<2xf32>
    %157 = vector.multi_reduction <add>, %156, %cst_60 [1] : vector<2x32xf32> to vector<2xf32>
    %158 = vector.shape_cast %157 : vector<2xf32> to vector<2x1xf32>
    %159 = vector.broadcast %154 : vector<1x1xf32> to vector<2x1xf32>
    %160 = arith.addf %158, %159 : vector<2x1xf32>
    %c0_61 = arith.constant 0 : index
    %c0_62 = arith.constant 0 : index
    %161 = vector.load %arg8[%c0_61, %c0_62] : memref<2x1xf32, #tpu.memory_space<vmem>>, vector<2x1xf32>
    tpu.vector_store %arg8[%c0_61, %c0_62], %160 {strides = array<i32>} : memref<2x1xf32, #tpu.memory_space<vmem>>, vector<2x1xf32>,
    return
  }
}

</mosaic_0001>

<bundles_post_ra>
// kernel: transformer_forward.1
= control target key start
LH: loop header
LB: loop body
LE: loop exit
PB: predicated region body
PF: predicated region fallthrough
CT: control target
= control target key end

     0   :  { %vm40_vm0 = vcmask 130048   ;;  %v36_v13 = vlaneseq  ;;  %vm130_vm1 = vcmask 261120   ;;  %v4331_v25 = vmov 0.0   ;;  %s5234_s1 = inlined_call_operand.vmem [shape: f32[16,32], index: 1, kind: input, shape index: {}]   ;;  %s5235_s0 = inlined_call_operand.vmem [shape: f32[2,8,16], index: 0, kind: input, shape index: {}]   ;;  %s5236_s2 = inlined_call_operand.vmem [shape: f32[6,32,16], index: 2, kind: input, shape index: {}]   ;;  %s5237_s7 = inlined_call_operand.vmem [shape: f32[16,128], index: 7, kind: input, shape index: {}]   ;;  %s5238_s3 = inlined_call_operand.vmem [shape: f32[2,16,32], index: 3, kind: input, shape index: {}]   ;;  %s5239_s4 = inlined_call_operand.vmem [shape: bf16[32,2048], index: 4, kind: input, shape index: {}]   ;;  %s5240_s6 = inlined_call_operand.vmem [shape: bf16[2048,32], index: 6, kind: input, shape index: {}]   ;;  %s5241_s5 = inlined_call_operand.vmem [shape: f32[1,2048], index: 5, kind: input, shape index: {}]   ;;  %s5242_s8 = inlined_call_operand.vmem [shape: f32[2,1], index: 8, kind: output, shape index: {}]  }
   0x1   :  { %v35_v0 = vld [vmem:[%s5234_s1 + $0x8] sm:$0xff]  ;;  %v34_v1 = vld [vmem:[%s5234_s1] sm:$0xff]  ;;  %v125_v3 = vld [vmem:[%s5236_s2 + $0x18] sm:$0xff]  ;;  %vm4332_vm2 = vmmov 0   ;;  %vm532_vm3 = vcmask 64512   ;;  %vm3566_vm4 = vcmask 261127  }
   0x2   :  { %v30_v2 = vld [vmem:[%s5235_s0] sm:$0xff]  ;;  %4048 = vmatprep.subr.mxu0 %v35_v0  ;;  %v31_v4 = vld [vmem:[%s5235_s0 + $0x8] sm:$0xff]  ;;  %4055 = vmatprep.subr.mxu1 %v125_v3  ;;  %v3595_v5 = vld [vmem:[%s5236_s2 + $0x38] sm:$0xff]  ;;  %v4420_v14 = vshrl.u32 %v36_v13, 7  ;;  %vm3570_vm5 = vcmask 253952   ;;  %vm3580_vm6 = vcmask 7175  }
   0x3   :  { %4052 = vmatprep.mubr.msk.f32.mxu0 %vm40_vm0, %v30_v2  ;;  %4049 = vmatpush3.msra.mxu0 %v35_v0  ;;  %v124_v6 = vld [vmem:[%s5236_s2 + $0x10] sm:$0xff]  ;;  %v123_v8 = vld [vmem:[%s5236_s2 + $0x8] sm:$0xff]  ;;  %v122_v10 = vld [vmem:[%s5236_s2] sm:$0xff]  ;;  %vm3582_vm7 = vcmask 0  }
   0x4   :  { %4050 = vmatprep.subr.mxu0 %v34_v1  ;;  %4056 = vmatpush3.msra.mxu1 %v125_v3  ;;  %v3594_v7 = vld [vmem:[%s5236_s2 + $0x30] sm:$0xff]  ;;  %v3593_v9 = vld [vmem:[%s5236_s2 + $0x28] sm:$0xff]  ;;  %v3592_v11 = vld [vmem:[%s5236_s2 + $0x20] sm:$0xff]  ;;  %v4423_v15 = vsub.s32 0, %v4420_v14  ;;  %v4464_v26 = vsub.s32 3, %v4420_v14  ;;  %v4467_v27 = vsub.s32 1, %v4420_v14 }
   0x5   :  { %4051 = vmatpush3.msra.mxu0 %v34_v1  ;;  %4057 = vmatprep.subr.mxu1 %v124_v6  ;;  %v3601_v12 = vld [vmem:[%s5236_s2 + $0x58] sm:$0xff]  ;;  %v4428_v16 = vld [vmem:[%s5237_s7] sm:$0xff]  ;;  %v3600_v22 = vld [vmem:[%s5236_s2 + $0x50] sm:$0xff]  ;;  %v4472_v34 = vsub.s32 5, %v4420_v14 }
   0x6   :  { %4053 = vmatmul.mubr.msk.f32.vlgmr.msra.gmra.mxu0 %vm40_vm0, %v31_v4  ;;  %4066 = vmatprep.subr.mxu0 %v3595_v5  ;;  %v39_v17 = vrot.slane %v4428_v16, %v4423_v15  ;;  %v3599_v23 = vld [vmem:[%s5236_s2 + $0x48] sm:$0xff]  ;;  %v3598_v24 = vld [vmem:[%s5236_s2 + $0x40] sm:$0xff]  ;;  %v220_v30 = vrot.slane %v4428_v16, %v4464_v26  ;;  %v129_v35 = vrot.slane %v4428_v16, %v4467_v27  ;;  %v3619_v60 = vld [vmem:[%s5236_s2 + $0x98] sm:$0xff] }
   0x7   :  { %4067 = vmatpush3.msra.mxu0 %v3595_v5  ;;  %4058 = vmatpush3.msra.mxu1 %v124_v6  ;;  %v304_v38 = vrot.slane %v4428_v16, %v4472_v34  ;;  %v3613_v61 = vld [vmem:[%s5236_s2 + $0x78] sm:$0xff]  ;;  %v3618_v2 = vld [vmem:[%s5236_s2 + $0x90] sm:$0xff]  ;;  %v3617_v4 = vld [vmem:[%s5236_s2 + $0x88] sm:$0xff] }
   0x8   :  { %4068 = vmatprep.subr.mxu0 %v3594_v7  ;;  %4059 = vmatprep.subr.mxu1 %v123_v8  ;;  %v3612_v6 = vld [vmem:[%s5236_s2 + $0x70] sm:$0xff]  ;;  %v3622_v13 = vld [vmem:[%s5236_s2 + $0xa0] sm:$0xff] }
   0x9   :  { %4069 = vmatpush3.msra.mxu0 %v3594_v7  ;;  %4060 = vmatpush3.msra.mxu1 %v123_v8  ;;  %v3616_v7 = vld [vmem:[%s5236_s2 + $0x80] sm:$0xff]  ;;  %v3611_v8 = vld [vmem:[%s5236_s2 + $0x68] sm:$0xff] }
   0xa   :  { %4070 = vmatprep.subr.mxu0 %v3593_v9  ;;  %4061 = vmatprep.subr.mxu1 %v122_v10 }
   0xb   :  { %4071 = vmatpush3.msra.mxu0 %v3593_v9  ;;  %4062 = vmatpush3.msra.mxu1 %v122_v10  ;;  %v3610_v9 = vld [vmem:[%s5236_s2 + $0x60] sm:$0xff]  ;;  %v3625_v10 = vld [vmem:[%s5236_s2 + $0xb8] sm:$0xff] }
   0xc   :  { %4072 = vmatprep.subr.mxu0 %v3592_v11  ;;  %4077 = vmatprep.subr.mxu1 %v3601_v12 }
   0xd   :  { %4073 = vmatpush3.msra.mxu0 %v3592_v11  ;;  %v3624_v11 = vld [vmem:[%s5236_s2 + $0xb0] sm:$0xff] }
   0xe   :  { %4088 = vmatprep.subr.mxu0 %v4331_v25 }
  0xc6   :  { %v4054_v18 = vpop.f32.mrf.mxu0 }
  0xc7   :  { %v4434_v21 = vadd.f32 %v4054_v18, %v39_v17 }
  0xc8   :  { %v113_v19 = vpop.f32.mrf.mxu0 }
  0xc9   :  { %v4432_v20 = vadd.f32 %v113_v19, %v39_v17 }
  0xcb   :  { %4063 = vmatprep.mubr.msk.f32.mxu1 %vm130_vm1, %v4432_v20  ;;  %4074 = vmatprep.mubr.msk.f32.mxu0 %vm130_vm1, %v4432_v20 }
  0xcc   :  { %4064 = vmatmul.mubr.msk.f32.vlgmr.msra.gmra.mxu1 %vm130_vm1, %v4434_v21  ;;  %4075 = vmatmul.mubr.msk.f32.vlgmr.msra.gmra.mxu0 %vm130_vm1, %v4434_v21 }
  0xcd   :  { %4078 = vmatpush3.msra.mxu1 %v3601_v12  ;;  %4085 = vmatprep.mubr.msk.f32.mxu1 %vm130_vm1, %v4432_v20  ;;  %v3623_v12 = vld [vmem:[%s5236_s2 + $0xa8] sm:$0xff] }
  0xce   :  { %4079 = vmatprep.subr.mxu1 %v3600_v22  ;;  %4090 = vmatprep.mubr.msk.f32.mxu0 %vm4332_vm2, %v4331_v25 }
  0xcf   :  { %4080 = vmatpush3.msra.mxu1 %v3600_v22 }
  0xd0   :  { %4081 = vmatprep.subr.mxu1 %v3599_v23 }
  0xd1   :  { %4082 = vmatpush3.msra.mxu1 %v3599_v23  ;;  %v4553_v23 = vsub.s32 4, %v4420_v14 }
  0xd2   :  { %4083 = vmatprep.subr.mxu1 %v3598_v24 }
  0xd3   :  { %4084 = vmatpush3.msra.mxu1 %v3598_v24 }
  0xd4   :  { %4086 = vmatmul.mubr.msk.f32.vlgmr.msra.gmra.mxu1 %vm130_vm1, %v4434_v21  ;;  %4098 = vmatprep.subr.mxu1 %v4331_v25 }
  0xd5   :  { %4100 = vmatprep.mubr.msk.f32.mxu1 %vm4332_vm2, %v4331_v25 }
 0x18c   :  { %v4065_v28 = vpop.f32.mrf.mxu1  ;;  %v4076_v29 = vpop.f32.mrf.mxu0 }
 0x18d   :  { %v293_v37 = vadd.f32 %v4076_v29, %v220_v30  ;;  %v209_v40 = vadd.f32 %v4065_v28, %v129_v35  ;;  %v4556_v28 = vsub.s32 2, %v4420_v14  ;;  %v795_v29 = vrot.slane %v4428_v16, %v4553_v23 }
 0x18e   :  { %v287_v31 = vpop.f32.mrf.mxu0  ;;  %v203_v32 = vpop.f32.mrf.mxu1 }
 0x18f   :  { %v288_v33 = vadd.f32 %v287_v31, %v220_v30  ;;  %v204_v36 = vadd.f32 %v203_v32, %v129_v35  ;;  %v4563_v35 = vsub.s32 6, %v4420_v14 }
 0x191   :  { %4089 = vmatpush3.xpose.msk.msra.mxu0 %vm40_vm0, %v288_v33  ;;  %v711_v33 = vrot.slane %v4428_v16, %v4556_v28 }
 0x192   :  { %4093 = vmatprep.subr.mxu0 %v4331_v25 }
 0x194   :  { %v4087_v39 = vpop.f32.mrf.mxu1  ;;  %4091 = vmatmul.mubr.msk.f32.vlgmr.msra.gmra.mxu0 %vm40_vm0, %v204_v36 }
 0x195   :  { %4094 = vmatpush3.xpose.msk.msra.mxu0 %vm40_vm0, %v293_v37  ;;  %4095 = vmatprep.mubr.msk.f32.mxu0 %vm4332_vm2, %v4331_v25  ;;  %v377_v42 = vadd.f32 %v4087_v39, %v304_v38  ;;  %v879_v39 = vrot.slane %v4428_v16, %v4563_v35 }
 0x196   :  { %v371_v41 = vpop.f32.mrf.mxu1  ;;  %4103 = vmatprep.subr.mxu0 %v4331_v25 }
 0x197   :  { %v372_v43 = vadd.f32 %v371_v41, %v304_v38 }
 0x198   :  { %4096 = vmatmul.mubr.msk.f32.vlgmr.msra.gmra.mxu0 %vm40_vm0, %v209_v40 }
 0x199   :  { %4099 = vmatpush3.msra.mxu1 %v372_v43  ;;  %4104 = vmatpush3.msra.mxu0 %v377_v42 }
 0x19a   :  { %4105 = vmatprep.mubr.msk.f32.mxu0 %vm4332_vm2, %v4331_v25  ;;  %4119 = vmatprep.subr.mxu0 %v3619_v60 }
 0x19b   :  { %4108 = vmatprep.subr.mxu1 %v3613_v61 }
 0x254   :  { %v452_v44 = vpop.f32.mrf.mxu0 }
 0x255   :  { %v533_v49 = vsel %vm532_vm3, %v452_v44, -inf }
 0x256   :  { %v4092_v45 = vpop.f32.mrf.mxu0 }
 0x258   :  { %v528_v46 = vpop.f32.mrf.mxu0 }
 0x259   :  { %v536_v47 = vsel %vm532_vm3, %v528_v46, -inf }
 0x25a   :  { %537 = vmax.xlane.f32.xlu0 %v536_v47  ;;  %v4097_v48 = vpop.f32.mrf.mxu0 }
 0x25e   :  { %534 = vmax.xlane.f32.xlu0 %v533_v49 }
 0x2e3   :  { %v538_v50 = vpop.xlane.xlu0 %537 }
 0x2e4   :  { %v540_v51 = vsub.f32 %v528_v46, %v538_v50 }
 0x2e6   :  { %v543_v52 = vmul.f32 1.442695, %v540_v51 }
 0x2e7   :  { %v535_v53 = vpop.xlane.xlu0 %534 }
 0x2e8   :  { %4306 = vpow2.f32 %v543_v52  ;;  %v539_v54 = vsub.f32 %v452_v44, %v535_v53 }
 0x2ea   :  { %v541_v55 = vmul.f32 1.442695, %v539_v54 }
 0x2ec   :  { %4308 = vpow2.f32 %v541_v55 }
 0x2f5   :  { %v4307_v56 = vpop.eup %4306 }
 0x2f6   :  { %v548_v57 = vsel %vm532_vm3, %v4307_v56, 0.0 }
 0x2f7   :  { %549 = vadd.xlane.f32.xlu1 %v548_v57 }
 0x2f9   :  { %v4309_v58 = vpop.eup %4308 }
 0x2fa   :  { %v545_v59 = vsel %vm532_vm3, %v4309_v58, 0.0 }
 0x2fb   :  { %546 = vadd.xlane.f32.xlu1 %v545_v59 }
 0x380   :  { %v550_v62 = vpop.xlane.xlu1 %549 }
 0x381   :  { %4310 = vrcp.f32 %v550_v62 }
 0x384   :  { %v547_v63 = vpop.xlane.xlu1 %546 }
 0x385   :  { %4312 = vrcp.f32 %v547_v63 }
 0x38e   :  { %v4311_v0 = vpop.eup %4310 }
 0x38f   :  { %v554_v1 = vmul.f32 %v4311_v0, %v4307_v56 }
 0x391   :  { %4106 = vmatmul.mubr.msk.f32.vlgmr.msra.gmra.mxu0 %vm532_vm3, %v554_v1 }
 0x392   :  { %v4313_v3 = vpop.eup %4312  ;;  %4120 = vmatpush3.msra.mxu0 %v3619_v60  ;;  %4127 = vmatprep.mubr.msk.f32.mxu0 %vm130_vm1, %v4432_v20  ;;  %v702_v60 = vld [vmem:[%s5238_s3 + $0x8] sm:$0xff] }
 0x393   :  { %4121 = vmatprep.subr.mxu0 %v3618_v2  ;;  %v553_v5 = vmul.f32 %v4313_v3, %v4309_v58  ;;  %v701_v3 = vld [vmem:[%s5238_s3] sm:$0xff] }
 0x394   :  { %4122 = vmatpush3.msra.mxu0 %v3618_v2 }
 0x395   :  { %4123 = vmatprep.subr.mxu0 %v3617_v4  ;;  %4101 = vmatmul.mubr.msk.f32.vlgmr.msra.gmra.mxu1 %vm532_vm3, %v553_v5  ;;  %v3634_v5 = vld [vmem:[%s5238_s3 + $0x10] sm:$0xff] }
 0x396   :  { %4109 = vmatpush3.msra.mxu1 %v3613_v61  ;;  %4124 = vmatpush3.msra.mxu0 %v3617_v4  ;;  %v3635_v4 = vld [vmem:[%s5238_s3 + $0x18] sm:$0xff] }
 0x397   :  { %4110 = vmatprep.subr.mxu1 %v3612_v6  ;;  %4116 = vmatprep.mubr.msk.f32.mxu1 %vm130_vm1, %v4432_v20 }
 0x398   :  { %4125 = vmatprep.subr.mxu0 %v3616_v7  ;;  %4111 = vmatpush3.msra.mxu1 %v3612_v6 }
 0x399   :  { %4126 = vmatpush3.msra.mxu0 %v3616_v7  ;;  %4112 = vmatprep.subr.mxu1 %v3611_v8 }
 0x39a   :  { %4128 = vmatmul.mubr.msk.f32.vlgmr.msra.gmra.mxu0 %vm130_vm1, %v4434_v21  ;;  %4113 = vmatpush3.msra.mxu1 %v3611_v8 }
 0x39b   :  { %4114 = vmatprep.subr.mxu1 %v3610_v9  ;;  %4141 = vmatprep.subr.mxu0 %v4331_v25 }
 0x39c   :  { %4115 = vmatpush3.msra.mxu1 %v3610_v9  ;;  %4143 = vmatprep.mubr.msk.f32.mxu0 %vm4332_vm2, %v4331_v25 }
 0x39d   :  { %4117 = vmatmul.mubr.msk.f32.vlgmr.msra.gmra.mxu1 %vm130_vm1, %v4434_v21  ;;  %4130 = vmatprep.subr.mxu1 %v3625_v10 }
 0x39e   :  { %4131 = vmatpush3.msra.mxu1 %v3625_v10  ;;  %4138 = vmatprep.mubr.msk.f32.mxu1 %vm130_vm1, %v4432_v20  ;;  %v4602_v10 = vsub.s32 7, %v4420_v14 }
 0x39f   :  { %4132 = vmatprep.subr.mxu1 %v3624_v11 }
 0x3a0   :  { %4133 = vmatpush3.msra.mxu1 %v3624_v11 }
 0x3a1   :  { %4134 = vmatprep.subr.mxu1 %v3623_v12 }
 0x3a2   :  { %4135 = vmatpush3.msra.mxu1 %v3623_v12  ;;  %v1443_v12 = vrot.slane %v4428_v16, %v4602_v10 }
 0x3a3   :  { %4136 = vmatprep.subr.mxu1 %v3622_v13 }
 0x3a4   :  { %4137 = vmatpush3.msra.mxu1 %v3622_v13 }
 0x3a5   :  { %4139 = vmatmul.mubr.msk.f32.vlgmr.msra.gmra.mxu1 %vm130_vm1, %v4434_v21  ;;  %4151 = vmatprep.subr.mxu1 %v4331_v25 }
 0x3a6   :  { %4153 = vmatprep.mubr.msk.f32.mxu1 %vm4332_vm2, %v4331_v25 }
 0x451   :  { %v4548_v17 = vpop.f32.mrf.mxu0 }
 0x453   :  { %v4107_v18 = vpop.f32.mrf.mxu0 }
 0x455   :  { %v4550_v19 = vpop.f32.mrf.mxu1 }
 0x457   :  { %v4102_v22 = vpop.f32.mrf.mxu1 }
 0x45a   :  { %v4129_v24 = vpop.f32.mrf.mxu0 }
 0x45b   :  { %v868_v38 = vadd.f32 %v4129_v24, %v795_v29 }
 0x45c   :  { %v862_v30 = vpop.f32.mrf.mxu0 }
 0x45d   :  { %v863_v31 = vadd.f32 %v862_v30, %v795_v29  ;;  %v4118_v32 = vpop.f32.mrf.mxu1 }
 0x45e   :  { %v784_v40 = vadd.f32 %v4118_v32, %v711_v33 }
 0x45f   :  { %4142 = vmatpush3.xpose.msk.msra.mxu0 %vm40_vm0, %v863_v31  ;;  %v778_v36 = vpop.f32.mrf.mxu1 }
 0x460   :  { %v779_v37 = vadd.f32 %v778_v36, %v711_v33  ;;  %4146 = vmatprep.subr.mxu0 %v4331_v25 }
 0x462   :  { %4144 = vmatmul.mubr.msk.f32.vlgmr.msra.gmra.mxu0 %vm40_vm0, %v779_v37 }
 0x463   :  { %4147 = vmatpush3.xpose.msk.msra.mxu0 %vm40_vm0, %v868_v38  ;;  %4148 = vmatprep.mubr.msk.f32.mxu0 %vm4332_vm2, %v4331_v25 }
 0x464   :  { %4156 = vmatprep.subr.mxu0 %v4331_v25 }
 0x465   :  { %v4140_v41 = vpop.f32.mrf.mxu1 }
 0x466   :  { %v952_v42 = vadd.f32 %v4140_v41, %v879_v39  ;;  %4149 = vmatmul.mubr.msk.f32.vlgmr.msra.gmra.mxu0 %vm40_vm0, %v784_v40 }
 0x467   :  { %v946_v43 = vpop.f32.mrf.mxu1  ;;  %4158 = vmatprep.mubr.msk.f32.mxu0 %vm4332_vm2, %v4331_v25 }
 0x468   :  { %v947_v44 = vadd.f32 %v946_v43, %v879_v39  ;;  %4157 = vmatpush3.msra.mxu0 %v952_v42  ;;  %v1512_v43 = vld [vmem:[%s5239_s4 + $0xc0] sm:$0xff] }
 0x469   :  { %4168 = vmatprep.subr.mxu0 %v702_v60 }
 0x46a   :  { %4152 = vmatpush3.msra.mxu1 %v947_v44  ;;  %v1505_v44 = vld [vmem:[%s5239_s4 + $0x88] sm:$0xff] }
 0x46b   :  { %4161 = vmatprep.subr.mxu1 %v3635_v4 }
 0x522   :  { %v1027_v45 = vpop.f32.mrf.mxu0 }
 0x523   :  { %v1107_v46 = vsel %vm532_vm3, %v1027_v45, -inf }
 0x524   :  { %1108 = vmax.xlane.f32.xlu0 %v1107_v46  ;;  %v4145_v47 = vpop.f32.mrf.mxu0  ;;  %v1513_v46 = vld [vmem:[%s5239_s4 + $0xc8] sm:$0xff] }
 0x526   :  { %v1103_v48 = vpop.f32.mrf.mxu0 }
 0x527   :  { %v1110_v49 = vsel %vm532_vm3, %v1103_v48, -inf }
 0x528   :  { %1111 = vmax.xlane.f32.xlu1 %v1110_v49  ;;  %v4150_v50 = vpop.f32.mrf.mxu0  ;;  %v3659_v49 = vcombine.high %v1505_v44, %v1513_v46 }
 0x529   :  { %v1488_v50 = vld [vmem:[%s5239_s4] sm:$0xff] }
 0x5ad   :  { %v1109_v51 = vpop.xlane.xlu0 %1108 }
 0x5ae   :  { %v1113_v52 = vsub.f32 %v1027_v45, %v1109_v51  ;;  %v1496_v51 = vld [vmem:[%s5239_s4 + $0x40] sm:$0xff] }
 0x5b0   :  { %v1115_v53 = vmul.f32 1.442695, %v1113_v52  ;;  %v1489_v52 = vld [vmem:[%s5239_s4 + $0x8] sm:$0xff] }
 0x5b1   :  { %v1112_v54 = vpop.xlane.xlu1 %1111 }
 0x5b2   :  { %4314 = vpow2.f32 %v1115_v53  ;;  %v1114_v55 = vsub.f32 %v1103_v48, %v1112_v54  ;;  %v3658_v48 = vcombine.low %v1505_v44, %v1513_v46  ;;  %v3641_v53 = vcombine.high %v1488_v50, %v1496_v51  ;;  %v1497_v54 = vld [vmem:[%s5239_s4 + $0x48] sm:$0xff]  ;;  %v1500_v44 = vld [vmem:[%s5239_s4 + $0x60] sm:$0xff] }
 0x5b3   :  { %v1501_v46 = vld [vmem:[%s5239_s4 + $0x68] sm:$0xff] }
 0x5b4   :  { %v1117_v25 = vmul.f32 1.442695, %v1114_v55  ;;  %v3640_v55 = vcombine.low %v1488_v50, %v1496_v51  ;;  %v1510_v51 = vld [vmem:[%s5239_s4 + $0xb0] sm:$0xff] }
 0x5b6   :  { %4316 = vpow2.f32 %v1117_v25  ;;  %v3642_v25 = vcombine.low %v1489_v52, %v1497_v54 }
 0x5bf   :  { %v4315_v56 = vpop.eup %4314 }
 0x5c0   :  { %v1119_v57 = vsel %vm532_vm3, %v4315_v56, 0.0 }
 0x5c1   :  { %1120 = vadd.xlane.f32.xlu0 %v1119_v57  ;;  %v1506_v57 = vld [vmem:[%s5239_s4 + $0x90] sm:$0xff] }
 0x5c3   :  { %v4317_v58 = vpop.eup %4316 }
 0x5c4   :  { %v1122_v59 = vsel %vm532_vm3, %v4317_v58, 0.0 }
 0x5c5   :  { %1123 = vadd.xlane.f32.xlu1 %v1122_v59  ;;  %v1507_v59 = vld [vmem:[%s5239_s4 + $0x98] sm:$0xff] }
 0x64a   :  { %v1121_v61 = vpop.xlane.xlu0 %1120 }
 0x64b   :  { %4318 = vrcp.f32 %v1121_v61 }
 0x64e   :  { %v1124_v62 = vpop.xlane.xlu1 %1123 }
 0x64f   :  { %4320 = vrcp.f32 %v1124_v62  ;;  %v1515_v62 = vld [vmem:[%s5239_s4 + $0xd8] sm:$0xff] }
 0x658   :  { %v4319_v63 = vpop.eup %4318 }
 0x659   :  { %v1127_v0 = vmul.f32 %v4319_v63, %v4315_v56  ;;  %v3643_v56 = vcombine.high %v1489_v52, %v1497_v54  ;;  %v1518_v52 = vld [vmem:[%s5239_s4 + $0xf0] sm:$0xff]  ;;  %v1519_v54 = vld [vmem:[%s5239_s4 + $0xf8] sm:$0xff] }
 0x65b   :  { %4154 = vmatmul.mubr.msk.f32.vlgmr.msra.gmra.mxu1 %vm532_vm3, %v1127_v0  ;;  %v3662_v0 = vcombine.low %v1507_v59, %v1515_v62 }
 0x65c   :  { %v4321_v1 = vpop.eup %4320  ;;  %4162 = vmatpush3.msra.mxu1 %v3635_v4 }
 0x65d   :  { %v1128_v2 = vmul.f32 %v4321_v1, %v4317_v58  ;;  %4163 = vmatprep.subr.mxu1 %v3634_v5  ;;  %v1514_v58 = vld [vmem:[%s5239_s4 + $0xd0] sm:$0xff]  ;;  %v3663_v1 = vcombine.high %v1507_v59, %v1515_v62  ;;  %v1503_v62 = vld [vmem:[%s5239_s4 + $0x78] sm:$0xff] }
 0x65e   :  { %4164 = vmatpush3.msra.mxu1 %v3634_v5  ;;  %v3661_v61 = vcombine.high %v1506_v57, %v1514_v58  ;;  %v3660_v63 = vcombine.low %v1506_v57, %v1514_v58  ;;  %v1494_v58 = vld [vmem:[%s5239_s4 + $0x30] sm:$0xff] }
 0x65f   :  { %4159 = vmatmul.mubr.msk.f32.vlgmr.msra.gmra.mxu0 %vm532_vm3, %v1128_v2  ;;  %v1502_v59 = vld [vmem:[%s5239_s4 + $0x70] sm:$0xff] }
 0x660   :  { %4169 = vmatpush3.msra.mxu0 %v702_v60  ;;  %4172 = vmatprep.mubr.msk.f32.mxu0 %vm40_vm0, %v4550_v19  ;;  %v4333_v60 = vmov 0  }
 0x661   :  { %4170 = vmatprep.subr.mxu0 %v701_v3 }
 0x662   :  { %4171 = vmatpush3.msra.mxu0 %v701_v3 }
 0x663   :  { %4173 = vmatmul.mubr.msk.f32.vlgmr.msra.gmra.mxu0 %vm40_vm0, %v4548_v17  ;;  %1822 = vmatprep.subr.bf16.mxu0 %v3659_v49 }
 0x664   :  { %1823 = vmatpush1.bf16.msra.mxu0 %v3658_v48  ;;  %1842 = vmatprep.mubr.bf16.mxu0 %v4333_v60 }
 0x665   :  { %1824 = vmatprep.subr.bf16.mxu0 %v3643_v56  ;;  %v3669_v56 = vcombine.high %v1510_v51, %v1518_v52 }
 0x668   :  { %1825 = vmatpush1.bf16.msra.mxu0 %v3642_v25 }
 0x669   :  { %1908 = vmatprep.subr.bf16.mxu0 %v3663_v1  ;;  %v3653_v1 = vcombine.high %v1494_v58, %v1502_v59 }
 0x71b   :  { %v1198_v6 = vpop.f32.mrf.mxu1 }
 0x71c   :  { %4165 = vmatprep.mubr.msk.f32.mxu1 %vm40_vm0, %v1198_v6 }
 0x71d   :  { %v4155_v7 = vpop.f32.mrf.mxu1 }
 0x71f   :  { %v1271_v8 = vpop.f32.mrf.mxu0 }
 0x720   :  { %4166 = vmatmul.mubr.msk.f32.vlgmr.msra.gmra.mxu1 %vm40_vm0, %v1271_v8  ;;  %v33_v8 = vld [vmem:[%s5237_s7 + $0x8] sm:$0xff] }
 0x721   :  { %v4160_v9 = vpop.f32.mrf.mxu0  ;;  %1799 = vmatprep.mubr.bf16.mxu1 %v4333_v60 }
 0x722   :  { %v1478_v9 = vrot.slane %v33_v8, %v4423_v15 }
 0x723   :  { %v4174_v11 = vpop.f32.mrf.mxu0 }
 0x725   :  { %v1431_v18 = vpop.f32.mrf.mxu0 }
 0x7e0   :  { %v4167_v13 = vpop.f32.mrf.mxu1 }
 0x7e1   :  { %v1437_v17 = vadd.f32 %v4174_v11, %v4167_v13 }
 0x7e2   :  { %v1350_v19 = vpop.f32.mrf.mxu1 }
 0x7e3   :  { %v1445_v22 = vadd.f32 %v1443_v12, %v1437_v17  ;;  %v1432_v24 = vadd.f32 %v1431_v18, %v1350_v19  ;;  %v1484_v17 = vrot.slane %v33_v8, %v4467_v27  ;;  %v4181_v8 = vld [vmem:[%s5240_s6 + $0xb8] sm:$0xff]  }
 0x7e5   :  { %v1444_v29 = vadd.f32 %v1443_v12, %v1432_v24  ;;  %v1447_v30 = vadd.f32 %v1445_v22, %v4434_v21  ;;  %v1490_v24 = vld [vmem:[%s5239_s4 + $0x10] sm:$0xff] }
 0x7e7   :  { %v1451_v31 = vsel %vm130_vm1, %v1447_v30, 0.0  ;;  %v1446_v32 = vadd.f32 %v1444_v29, %v4432_v20  ;;  %v1504_v20 = vld [vmem:[%s5239_s4 + $0x80] sm:$0xff]  ;;  %v1498_v29 = vld [vmem:[%s5239_s4 + $0x50] sm:$0xff] }
 0x7e8   :  { %1452 = vadd.xlane.f32.xlu1 %v1451_v31  ;;  %v3657_v45 = vcombine.high %v1504_v20, %v1512_v43  ;;  %v3656_v47 = vcombine.low %v1504_v20, %v1512_v43  ;;  %v1499_v31 = vld [vmem:[%s5239_s4 + $0x58] sm:$0xff]  ;;  %v1492_v43 = vld [vmem:[%s5239_s4 + $0x20] sm:$0xff] }
 0x7e9   :  { %v1448_v14 = vsel %vm130_vm1, %v1446_v32, 0.0  ;;  %v3649_v49 = vcombine.high %v1492_v43, %v1500_v44 }
 0x7ea   :  { %1449 = vadd.xlane.f32.xlu0 %v1448_v14  ;;  %1779 = vmatprep.subr.bf16.mxu1 %v3657_v45  ;;  %v1493_v45 = vld [vmem:[%s5239_s4 + $0x28] sm:$0xff] }
 0x7eb   :  { %1780 = vmatpush1.bf16.msra.mxu1 %v3656_v47  ;;  %v3651_v50 = vcombine.high %v1493_v45, %v1501_v46  ;;  %v3650_v25 = vcombine.low %v1493_v45, %v1501_v46  ;;  %v4208_v45 = vld [vmem:[%s5240_s6] sm:$0xff]  }
 0x7ec   :  { %1781 = vmatprep.subr.bf16.mxu1 %v3641_v53  ;;  %v1511_v53 = vld [vmem:[%s5239_s4 + $0xb8] sm:$0xff]  ;;  %v4209_v46 = vld [vmem:[%s5240_s6 + $0x80] sm:$0xff]  }
 0x7ed   :  { %v3671_v57 = vcombine.high %v1511_v53, %v1519_v54 }
 0x7ef   :  { %1782 = vmatpush1.bf16.msra.mxu1 %v3640_v55  ;;  %v3648_v55 = vcombine.low %v1492_v43, %v1500_v44  ;;  %v4206_v43 = vld [vmem:[%s5240_s6 + $0x40] sm:$0xff]  }
 0x7f0   :  { %1865 = vmatprep.subr.bf16.mxu1 %v3661_v61  ;;  %v1495_v61 = vld [vmem:[%s5239_s4 + $0x38] sm:$0xff]  ;;  %v4207_v44 = vld [vmem:[%s5240_s6 + $0xc0] sm:$0xff]  }
 0x871   :  { %v1453_v33 = vpop.xlane.xlu1 %1452 }
 0x872   :  { %v1456_v36 = vmul.f32 0.03125, %v1453_v33 }
 0x873   :  { %v1450_v16 = vpop.xlane.xlu0 %1449 }
 0x874   :  { %v1458_v37 = vsub.f32 %v1447_v30, %v1456_v36  ;;  %v1455_v38 = vmul.f32 0.03125, %v1450_v16  ;;  %v1491_v30 = vld [vmem:[%s5239_s4 + $0x18] sm:$0xff]  ;;  %v3645_v36 = vcombine.high %v1490_v24, %v1498_v29 }
 0x875   :  { %v3647_v16 = vcombine.high %v1491_v30, %v1499_v31 }
 0x876   :  { %v1457_v39 = vsub.f32 %v1446_v32, %v1455_v38  ;;  %v1460_v40 = vmul.f32 %v1458_v37, %v1458_v37  ;;  %v1516_v38 = vld [vmem:[%s5239_s4 + $0xe0] sm:$0xff] }
 0x878   :  { %v1464_v41 = vsel %vm130_vm1, %v1460_v40, 0.0  ;;  %v1459_v42 = vmul.f32 %v1457_v39, %v1457_v39  ;;  %v1517_v40 = vld [vmem:[%s5239_s4 + $0xe8] sm:$0xff] }
 0x879   :  { %1465 = vadd.xlane.f32.xlu1 %v1464_v41  ;;  %v3644_v41 = vcombine.low %v1490_v24, %v1498_v29  ;;  %v4191_v24 = vld [vmem:[%s5240_s6 + $0xe0] sm:$0xff]  }
 0x87a   :  { %v1461_v21 = vsel %vm130_vm1, %v1459_v42, 0.0  ;;  %v3646_v42 = vcombine.low %v1491_v30, %v1499_v31  ;;  %v4192_v29 = vld [vmem:[%s5240_s6 + $0x20] sm:$0xff]   ;;  %v4194_v31 = vld [vmem:[%s5240_s6 + $0x58] sm:$0xff]  }
 0x87b   :  { %1462 = vadd.xlane.f32.xlu0 %v1461_v21  ;;  %v4193_v30 = vld [vmem:[%s5240_s6 + $0xa0] sm:$0xff]  }
 0x902   :  { %v1466_v2 = vpop.xlane.xlu1 %1465 }
 0x903   :  { %v1468_v3 = vmul.f32 0.03125, %v1466_v2  ;;  %v3655_v2 = vcombine.high %v1495_v61, %v1503_v62 }
 0x904   :  { %v1463_v4 = vpop.xlane.xlu0 %1462 }
 0x905   :  { %v1470_v5 = vadd.f32 1e-05, %v1468_v3  ;;  %v1467_v6 = vmul.f32 0.03125, %v1463_v4  ;;  %v3652_v3 = vcombine.low %v1494_v58, %v1502_v59  ;;  %v3654_v4 = vcombine.low %v1495_v61, %v1503_v62 }
 0x907   :  { %4322 = vrsqrt.f32 %v1470_v5  ;;  %v1469_v7 = vadd.f32 1e-05, %v1467_v6  ;;  %v4178_v5 = vld [vmem:[%s5240_s6 + $0x78] sm:$0xff]  }
 0x908   :  { %v4179_v6 = vld [vmem:[%s5240_s6 + $0xf8] sm:$0xff]  }
 0x909   :  { %4324 = vrsqrt.f32 %v1469_v7  ;;  %v4180_v7 = vld [vmem:[%s5240_s6 + $0x38] sm:$0xff]  }
 0x914   :  { %v4323_v11 = vpop.eup %4322 }
 0x915   :  { %v1474_v12 = vmul.f32 %v4323_v11, %v1458_v37  ;;  %v1508_v37 = vld [vmem:[%s5239_s4 + $0xa0] sm:$0xff]  ;;  %v4184_v11 = vld [vmem:[%s5240_s6 + $0x30] sm:$0xff]  }
 0x916   :  { %v4325_v13 = vpop.eup %4324  ;;  %v3665_v21 = vcombine.high %v1508_v37, %v1516_v38  ;;  %v3664_v47 = vcombine.low %v1508_v37, %v1516_v38  ;;  %v4198_v37 = vld [vmem:[%s5240_s6 + $0x50] sm:$0xff]  }
 0x917   :  { %v1480_v18 = vmul.f32 %v1478_v9, %v1474_v12  ;;  %v1473_v19 = vmul.f32 %v4325_v13, %v1457_v39  ;;  %v1509_v39 = vld [vmem:[%s5239_s4 + $0xa8] sm:$0xff]  ;;  %v4185_v12 = vld [vmem:[%s5240_s6 + $0xb0] sm:$0xff]  }
 0x918   :  { %v3667_v20 = vcombine.high %v1509_v39, %v1517_v40  ;;  %v3666_v48 = vcombine.low %v1509_v39, %v1517_v40  ;;  %v4186_v13 = vld [vmem:[%s5240_s6 + $0x68] sm:$0xff]   ;;  %v4199_v38 = vld [vmem:[%s5240_s6 + $0xd0] sm:$0xff]  }
 0x919   :  { %v1479_v22 = vmul.f32 %v1478_v9, %v1473_v19  ;;  %v4667_v32 = vadd.f32 %v1484_v17, %v1480_v18  ;;  %v4182_v9 = vld [vmem:[%s5240_s6 + $0x70] sm:$0xff]   ;;  %v4188_v18 = vld [vmem:[%s5240_s6 + $0x28] sm:$0xff]  }
 0x91a   :  { %v4189_v19 = vld [vmem:[%s5240_s6 + $0xa8] sm:$0xff]   ;;  %v4200_v39 = vld [vmem:[%s5240_s6 + $0x10] sm:$0xff]  }
 0x91b   :  { %v4669_v14 = vadd.f32 %v1484_v17, %v1479_v22  ;;  %v4187_v17 = vld [vmem:[%s5240_s6 + $0xe8] sm:$0xff]   ;;  %v4190_v22 = vld [vmem:[%s5240_s6 + $0x60] sm:$0xff]   ;;  %v4201_v40 = vld [vmem:[%s5240_s6 + $0x90] sm:$0xff]  }
 0x91d   :  { %v4673_v33 = vpack.c.bf16 %v4667_v32, %v4669_v14 }
 0x91f   :  { %3672 = vmatmul.mubr.msk.bf16.vlgmr.msra.gmra.mxu1 %vm130_vm1, %v4673_v33  ;;  %3673 = vmatmul.mubr.msk.bf16.vlgmr.msra.gmra.mxu0 %vm130_vm1, %v4673_v33 }
 0x920   :  { %1866 = vmatpush1.bf16.msra.mxu1 %v3660_v63  ;;  %1909 = vmatpush1.bf16.msra.mxu0 %v3662_v0  ;;  %v3668_v63 = vcombine.low %v1510_v51, %v1518_v52  ;;  %v3670_v0 = vcombine.low %v1511_v53, %v1519_v54 }
 0x921   :  { %1867 = vmatprep.subr.bf16.mxu1 %v3645_v36  ;;  %1910 = vmatprep.subr.bf16.mxu0 %v3647_v16  ;;  %v4196_v36 = vld [vmem:[%s5240_s6 + $0x18] sm:$0xff]  }
 0x922   :  { %1885 = vmatprep.mubr.bf16.mxu1 %v4333_v60  ;;  %1928 = vmatprep.mubr.bf16.mxu0 %v4333_v60  ;;  %v4197_v16 = vld [vmem:[%s5240_s6 + $0x98] sm:$0xff]  }
 0x924   :  { %1868 = vmatpush1.bf16.msra.mxu1 %v3644_v41  ;;  %1911 = vmatpush1.bf16.msra.mxu0 %v3646_v42  ;;  %v4202_v41 = vld [vmem:[%s5240_s6 + $0x48] sm:$0xff]  }
 0x925   :  { %1951 = vmatprep.subr.bf16.mxu1 %v3665_v21  ;;  %1994 = vmatprep.subr.bf16.mxu0 %v3667_v20  ;;  %v4203_v42 = vld [vmem:[%s5240_s6 + $0xc8] sm:$0xff]  }
 0x926   :  { %v4204_v21 = vld [vmem:[%s5240_s6 + $0x8] sm:$0xff]  }
 0x927   :  { %3674 = vmatmul.mubr.msk.bf16.vlgmr.msra.gmra.mxu1 %vm130_vm1, %v4673_v33  ;;  %3675 = vmatmul.mubr.msk.bf16.vlgmr.msra.gmra.mxu0 %vm130_vm1, %v4673_v33  ;;  %v4205_v20 = vld [vmem:[%s5240_s6 + $0x88] sm:$0xff]  }
 0x928   :  { %1952 = vmatpush1.bf16.msra.mxu1 %v3664_v47  ;;  %1995 = vmatpush1.bf16.msra.mxu0 %v3666_v48  ;;  %v4210_v47 = vld [vmem:[%s5240_s6 + $0x178] sm:$0xff]  }
 0x929   :  { %1953 = vmatprep.subr.bf16.mxu1 %v3649_v49  ;;  %1996 = vmatprep.subr.bf16.mxu0 %v3651_v50  ;;  %v4211_v48 = vld [vmem:[%s5240_s6 + $0x1f8] sm:$0xff]   ;;  %v4850_v49 = vld [vmem:[%s5241_s5] sm:$0xff] }
 0x92a   :  { %1971 = vmatprep.mubr.bf16.mxu1 %v4333_v60  ;;  %2014 = vmatprep.mubr.bf16.mxu0 %v4333_v60  ;;  %v1531_v52 = vrot.slane %v4850_v49, %v4467_v27  ;;  %v1539_v53 = vrot.slane %v4850_v49, %v4464_v26  ;;  %v1527_v54 = vrot.slane %v4850_v49, %v4423_v15 }
 0x92c   :  { %1954 = vmatpush1.bf16.msra.mxu1 %v3648_v55  ;;  %1997 = vmatpush1.bf16.msra.mxu0 %v3650_v25  ;;  %v1535_v55 = vrot.slane %v4850_v49, %v4556_v28 }
 0x92d   :  { %2037 = vmatprep.subr.bf16.mxu1 %v3669_v56  ;;  %2080 = vmatprep.subr.bf16.mxu0 %v3671_v57 }
 0x92f   :  { %3676 = vmatmul.mubr.msk.bf16.vlgmr.msra.gmra.mxu1 %vm130_vm1, %v4673_v33  ;;  %3677 = vmatmul.mubr.msk.bf16.vlgmr.msra.gmra.mxu0 %vm130_vm1, %v4673_v33 }
 0x930   :  { %2038 = vmatpush1.bf16.msra.mxu1 %v3668_v63  ;;  %2081 = vmatpush1.bf16.msra.mxu0 %v3670_v0 }
 0x931   :  { %2039 = vmatprep.subr.bf16.mxu1 %v3653_v1  ;;  %2082 = vmatprep.subr.bf16.mxu0 %v3655_v2 }
 0x932   :  { %2057 = vmatprep.mubr.bf16.mxu1 %v4333_v60  ;;  %2100 = vmatprep.mubr.bf16.mxu0 %v4333_v60  ;;  %v4183_v60 = vld [vmem:[%s5240_s6 + $0xf0] sm:$0xff]  }
 0x934   :  { %2040 = vmatpush1.bf16.msra.mxu1 %v3652_v3  ;;  %2083 = vmatpush1.bf16.msra.mxu0 %v3654_v4 }
 0x935   :  { %3872 = vmatprep.subr.bf16.mxu1 %v4178_v5  ;;  %3894 = vmatprep.subr.bf16.mxu0 %v4179_v6 }
 0x937   :  { %3678 = vmatmul.mubr.msk.bf16.vlgmr.msra.gmra.mxu1 %vm130_vm1, %v4673_v33  ;;  %3679 = vmatmul.mubr.msk.bf16.vlgmr.msra.gmra.mxu0 %vm130_vm1, %v4673_v33  ;;  %v4195_v33 = vld [vmem:[%s5240_s6 + $0xd8] sm:$0xff]  }
 0x938   :  { %3873 = vmatpush3.bf16.msra.mxu1 %v4180_v7  ;;  %3895 = vmatpush3.bf16.msra.mxu0 %v4181_v8 }
 0x939   :  { %3874 = vmatprep.subr.bf16.mxu1 %v4182_v9  ;;  %3896 = vmatprep.subr.bf16.mxu0 %v4183_v60  ;;  %v1547_v60 = vrot.slane %v4850_v49, %v4472_v34 }
 0x93c   :  { %3875 = vmatpush3.bf16.msra.mxu1 %v4184_v11  ;;  %3897 = vmatpush3.bf16.msra.mxu0 %v4185_v12  ;;  %v1555_v11 = vrot.slane %v4850_v49, %v4602_v10 }
 0x93d   :  { %3876 = vmatprep.subr.bf16.mxu1 %v4186_v13  ;;  %3898 = vmatprep.subr.bf16.mxu0 %v4187_v17 }
 0x940   :  { %3877 = vmatpush3.bf16.msra.mxu1 %v4188_v18  ;;  %3899 = vmatpush3.bf16.msra.mxu0 %v4189_v19 }
 0x941   :  { %3878 = vmatprep.subr.bf16.mxu1 %v4190_v22  ;;  %3900 = vmatprep.subr.bf16.mxu0 %v4191_v24 }
 0x944   :  { %3879 = vmatpush3.bf16.msra.mxu1 %v4192_v29  ;;  %3901 = vmatpush3.bf16.msra.mxu0 %v4193_v30 }
 0x945   :  { %3880 = vmatprep.subr.bf16.mxu1 %v4194_v31  ;;  %3902 = vmatprep.subr.bf16.mxu0 %v4195_v33  ;;  %v4212_v33 = vld [vmem:[%s5240_s6 + $0x138] sm:$0xff]  }
 0x948   :  { %3881 = vmatpush3.bf16.msra.mxu1 %v4196_v36  ;;  %3903 = vmatpush3.bf16.msra.mxu0 %v4197_v16  ;;  %v4213_v36 = vld [vmem:[%s5240_s6 + $0x1b8] sm:$0xff]  }
 0x949   :  { %3882 = vmatprep.subr.bf16.mxu1 %v4198_v37  ;;  %3904 = vmatprep.subr.bf16.mxu0 %v4199_v38 }
 0x94c   :  { %3883 = vmatpush3.bf16.msra.mxu1 %v4200_v39  ;;  %3905 = vmatpush3.bf16.msra.mxu0 %v4201_v40  ;;  %v4214_v40 = vld [vmem:[%s5240_s6 + $0x170] sm:$0xff]  }
 0x94d   :  { %3884 = vmatprep.subr.bf16.mxu1 %v4202_v41  ;;  %3906 = vmatprep.subr.bf16.mxu0 %v4203_v42  ;;  %v4215_v41 = vld [vmem:[%s5240_s6 + $0x1f0] sm:$0xff]  }
 0x950   :  { %3885 = vmatpush3.bf16.msra.mxu1 %v4204_v21  ;;  %3907 = vmatpush3.bf16.msra.mxu0 %v4205_v20 }
 0x951   :  { %3886 = vmatprep.subr.bf16.mxu1 %v4206_v43  ;;  %3908 = vmatprep.subr.bf16.mxu0 %v4207_v44 }
 0x954   :  { %3887 = vmatpush3.bf16.msra.mxu1 %v4208_v45  ;;  %3909 = vmatpush3.bf16.msra.mxu0 %v4209_v46  ;;  %v4216_v46 = vld [vmem:[%s5240_s6 + $0x130] sm:$0xff]  }
 0x955   :  { %3916 = vmatprep.subr.bf16.mxu1 %v4210_v47  ;;  %3938 = vmatprep.subr.bf16.mxu0 %v4211_v48  ;;  %v4217_v47 = vld [vmem:[%s5240_s6 + $0x1b0] sm:$0xff]   ;;  %v4218_v48 = vld [vmem:[%s5240_s6 + $0x168] sm:$0xff]  }
 0x9df   :  { %v1801_v50 = vpop.f32.mrf.mxu1  ;;  %v1844_v51 = vpop.f32.mrf.mxu0 }
 0x9e0   :  { %v1802_v0 = vadd.f32 %v1801_v50, %v1527_v54  ;;  %v1845_v1 = vadd.f32 %v1844_v51, %v1535_v55 }
 0x9e1   :  { %v1803_v25 = vpop.f32.mrf.mxu1  ;;  %v1846_v56 = vpop.f32.mrf.mxu0 }
 0x9e2   :  { %v1804_v59 = vadd.f32 %v1803_v25, %v1531_v52  ;;  %v1847_v61 = vadd.f32 %v1846_v56, %v1539_v53  ;;  %v2111_v19 = vmax.f32 %v1802_v0, 0.0  ;;  %v2113_v22 = vmax.f32 %v1845_v1, 0.0  ;;  %v4220_v56 = vld [vmem:[%s5240_s6 + $0x128] sm:$0xff]   ;;  %v4225_v0 = vld [vmem:[%s5240_s6 + $0x1a0] sm:$0xff]   ;;  %v4226_v1 = vld [vmem:[%s5240_s6 + $0x158] sm:$0xff]  }
 0x9e3   :  { %v1805_v57 = vpop.f32.mrf.mxu1  ;;  %v1848_v58 = vpop.f32.mrf.mxu0 }
 0x9e4   :  { %v1806_v62 = vadd.f32 %v1805_v57, %v1527_v54  ;;  %v1849_v63 = vadd.f32 %v1848_v58, %v1535_v55  ;;  %v2112_v12 = vmax.f32 %v1804_v59, 0.0  ;;  %v2114_v13 = vmax.f32 %v1847_v61, 0.0  ;;  %v4219_v54 = vld [vmem:[%s5240_s6 + $0x1e8] sm:$0xff]   ;;  %v4222_v58 = vld [vmem:[%s5240_s6 + $0x160] sm:$0xff]  }
 0x9e5   :  { %v1807_v2 = vpop.f32.mrf.mxu1  ;;  %v1850_v3 = vpop.f32.mrf.mxu0  ;;  %v4221_v57 = vld [vmem:[%s5240_s6 + $0x1a8] sm:$0xff]   ;;  %v4223_v59 = vld [vmem:[%s5240_s6 + $0x1e0] sm:$0xff]  }
 0x9e6   :  { %v1808_v4 = vadd.f32 %v1807_v2, %v1531_v52  ;;  %v1851_v5 = vadd.f32 %v1850_v3, %v1539_v53  ;;  %v2127_v6 = vmax.f32 %v1806_v62, 0.0  ;;  %v2129_v7 = vmax.f32 %v1849_v63, 0.0  ;;  %v4224_v62 = vld [vmem:[%s5240_s6 + $0x120] sm:$0xff]   ;;  %v4227_v2 = vld [vmem:[%s5240_s6 + $0x1d8] sm:$0xff]  }
 0x9e7   :  { %v4860_v8 = vpop.f32.mrf.mxu1  ;;  %v4862_v9 = vpop.f32.mrf.mxu0 }
 0x9e8   :  { %v2128_v17 = vmax.f32 %v1808_v4, 0.0  ;;  %v2130_v18 = vmax.f32 %v1851_v5, 0.0  ;;  %v2143_v16 = vpack.c.bf16 %v2127_v6, %v2111_v19  ;;  %v2145_v37 = vpack.c.bf16 %v2129_v7, %v2113_v22  ;;  %v4228_v4 = vld [vmem:[%s5240_s6 + $0x118] sm:$0xff]   ;;  %v4230_v7 = vld [vmem:[%s5240_s6 + $0x150] sm:$0xff]   ;;  %v4235_v19 = vld [vmem:[%s5240_s6 + $0x1c8] sm:$0xff]  }
 0x9e9   :  { %v1889_v24 = vpop.f32.mrf.mxu1  ;;  %v1932_v29 = vpop.f32.mrf.mxu0  ;;  %v4229_v6 = vld [vmem:[%s5240_s6 + $0x198] sm:$0xff]   ;;  %v1543_v22 = vrot.slane %v4850_v49, %v4553_v23 }
 0x9ea   :  { %v2144_v30 = vpack.c.bf16 %v2128_v17, %v2112_v12  ;;  %v2146_v31 = vpack.c.bf16 %v2130_v18, %v2114_v13  ;;  %v1890_v42 = vadd.f32 %v1889_v24, %v1547_v60  ;;  %v1933_v21 = vadd.f32 %v1932_v29, %v1555_v11  ;;  %v4232_v12 = vld [vmem:[%s5240_s6 + $0x110] sm:$0xff]   ;;  %v4234_v18 = vld [vmem:[%s5240_s6 + $0x148] sm:$0xff]  }
 0x9eb   :  { %v4874_v38 = vpop.f32.mrf.mxu1  ;;  %v4876_v39 = vpop.f32.mrf.mxu0  ;;  %v4233_v17 = vld [vmem:[%s5240_s6 + $0x190] sm:$0xff]   ;;  %v1551_v24 = vrot.slane %v4850_v49, %v4563_v35  ;;  %v4959_v29 = vld [vmem:[%s5241_s5 + $0x8] sm:$0xff] }
 0x9ec   :  { %3219 = vmatprep.mubr.bf16.mxu1 %v2144_v30  ;;  %3260 = vmatprep.mubr.bf16.mxu0 %v2146_v31  ;;  %v2116_v50 = vmax.f32 %v1890_v42, 0.0  ;;  %v2118_v51 = vmax.f32 %v1933_v21, 0.0  ;;  %v4236_v31 = vld [vmem:[%s5240_s6 + $0x108] sm:$0xff]  }
 0x9ed   :  { %v1893_v20 = vpop.f32.mrf.mxu1  ;;  %v1936_v43 = vpop.f32.mrf.mxu0  ;;  %3220 = vmatmul.mubr.bf16.vlgmr.msra.gmra.mxu1 %v2143_v16  ;;  %3261 = vmatmul.mubr.bf16.vlgmr.msra.gmra.mxu0 %v2145_v37  ;;  %v4237_v49 = vld [vmem:[%s5240_s6 + $0x188] sm:$0xff]   ;;  %v4238_v37 = vld [vmem:[%s5240_s6 + $0x140] sm:$0xff]   ;;  %v1931_v21 = vadd.f32 %v4862_v9, %v1551_v24 }
 0x9ee   :  { %v1894_v44 = vadd.f32 %v1893_v20, %v1547_v60  ;;  %v1937_v45 = vadd.f32 %v1936_v43, %v1555_v11  ;;  %3917 = vmatpush3.bf16.msra.mxu1 %v4212_v33  ;;  %3939 = vmatpush3.bf16.msra.mxu0 %v4213_v36  ;;  %v4231_v60 = vld [vmem:[%s5240_s6 + $0x1d0] sm:$0xff]   ;;  %v1892_v33 = vadd.f32 %v4874_v38, %v1543_v22  ;;  %v4240_v43 = vld [vmem:[%s5240_s6 + $0x100] sm:$0xff]  }
 0x9ef   :  { %3918 = vmatprep.subr.bf16.mxu1 %v4214_v40  ;;  %3940 = vmatprep.subr.bf16.mxu0 %v4215_v41  ;;  %v4908_v61 = vpop.f32.mrf.mxu1  ;;  %v4913_v63 = vpop.f32.mrf.mxu0  ;;  %v1563_v36 = vrot.slane %v4959_v29, %v4467_v27  ;;  %v1935_v40 = vadd.f32 %v4876_v39, %v1551_v24  ;;  %v1571_v41 = vrot.slane %v4959_v29, %v4464_v26  ;;  %v4239_v27 = vld [vmem:[%s5240_s6 + $0x1c0] sm:$0xff]   ;;  %v4259_v24 = vld [vmem:[%s5240_s6 + $0x2d8] sm:$0xff]  }
 0x9f0   :  { %v2132_v52 = vmax.f32 %v1894_v44, 0.0  ;;  %v2134_v53 = vmax.f32 %v1937_v45, 0.0  ;;  %v1888_v38 = vadd.f32 %v4860_v8, %v1543_v22  ;;  %v2131_v39 = vmax.f32 %v1892_v33, 0.0  ;;  %v4241_v45 = vld [vmem:[%s5240_s6 + $0x180] sm:$0xff]   ;;  %v4242_v8 = vld [vmem:[%s5240_s6 + $0x278] sm:$0xff]  }
 0x9f1   :  { %v1975_v3 = vpop.f32.mrf.mxu1  ;;  %v2018_v5 = vpop.f32.mrf.mxu0  ;;  %v4258_v22 = vld [vmem:[%s5240_s6 + $0x258] sm:$0xff]  }
 0x9f2   :  { %v2148_v55 = vpack.c.bf16 %v2132_v52, %v2116_v50  ;;  %v2150_v25 = vpack.c.bf16 %v2134_v53, %v2118_v51  ;;  %3919 = vmatpush3.bf16.msra.mxu1 %v4216_v46  ;;  %3941 = vmatpush3.bf16.msra.mxu0 %v4217_v47  ;;  %v1976_v44 = vadd.f32 %v1975_v3, %v1563_v36  ;;  %v2133_v46 = vmax.f32 %v1935_v40, 0.0  ;;  %v4243_v47 = vld [vmem:[%s5240_s6 + $0x2f8] sm:$0xff]   ;;  %v4250_v3 = vld [vmem:[%s5240_s6 + $0x268] sm:$0xff]   ;;  %v4264_v40 = vld [vmem:[%s5240_s6 + $0x210] sm:$0xff]  }
 0x9f3   :  { %3920 = vmatprep.subr.bf16.mxu1 %v4218_v48  ;;  %3942 = vmatprep.subr.bf16.mxu0 %v4219_v54  ;;  %v4936_v11 = vpop.f32.mrf.mxu1  ;;  %v4941_v13 = vpop.f32.mrf.mxu0  ;;  %v2019_v9 = vadd.f32 %v2018_v5, %v1571_v41  ;;  %v2115_v48 = vmax.f32 %v1888_v38, 0.0  ;;  %v2117_v51 = vmax.f32 %v1931_v21, 0.0  ;;  %v4244_v53 = vld [vmem:[%s5240_s6 + $0x238] sm:$0xff]   ;;  %v4252_v5 = vld [vmem:[%s5240_s6 + $0x228] sm:$0xff]   ;;  %v1559_v21 = vrot.slane %v4959_v29, %v4423_v15 }
 0x9f4   :  { %3301 = vmatprep.mubr.bf16.mxu1 %v2148_v55  ;;  %3342 = vmatprep.mubr.bf16.mxu0 %v2150_v25  ;;  %v2120_v55 = vmax.f32 %v1976_v44, 0.0  ;;  %v4245_v25 = vld [vmem:[%s5240_s6 + $0x2b8] sm:$0xff]   ;;  %v4266_v38 = vld [vmem:[%s5240_s6 + $0x248] sm:$0xff]  }
 0x9f5   :  { %v1979_v30 = vpop.f32.mrf.mxu1  ;;  %v2022_v16 = vpop.f32.mrf.mxu0  ;;  %v2147_v54 = vpack.c.bf16 %v2131_v39, %v2115_v48  ;;  %v4268_v39 = vld [vmem:[%s5240_s6 + $0x208] sm:$0xff]   ;;  %v1978_v44 = vadd.f32 %v4936_v11, %v1559_v21  ;;  %v4271_v11 = vld [vmem:[%s5240_s6 + $0x2c0] sm:$0xff]   ;;  %v1974_v48 = vadd.f32 %v4908_v61, %v1559_v21  ;;  %v4274_v61 = vld [vmem:[%s5240_s6 + $0x378] sm:$0xff]  }
 0x9f6   :  { %3921 = vmatpush3.bf16.msra.mxu1 %v4220_v56  ;;  %3943 = vmatpush3.bf16.msra.mxu0 %v4221_v57  ;;  %v1980_v42 = vadd.f32 %v1979_v30, %v1563_v36  ;;  %v2023_v20 = vadd.f32 %v2022_v16, %v1571_v41  ;;  %v2149_v56 = vpack.c.bf16 %v2133_v46, %v2117_v51  ;;  %v2122_v57 = vmax.f32 %v2019_v9, 0.0  ;;  %v4261_v36 = vld [vmem:[%s5240_s6 + $0x298] sm:$0xff]   ;;  %v4262_v16 = vld [vmem:[%s5240_s6 + $0x250] sm:$0xff]   ;;  %v4269_v15 = vld [vmem:[%s5240_s6 + $0x288] sm:$0xff]  }
 0x9f7   :  { %3922 = vmatprep.subr.bf16.mxu1 %v4222_v58  ;;  %3944 = vmatprep.subr.bf16.mxu0 %v4223_v59  ;;  %v4246_v58 = vld [vmem:[%s5240_s6 + $0x270] sm:$0xff]   ;;  %v4270_v46 = vld [vmem:[%s5240_s6 + $0x240] sm:$0xff]  }
 0x9f8   :  { %v2136_v50 = vmax.f32 %v1980_v42, 0.0  ;;  %v2138_v52 = vmax.f32 %v2023_v20, 0.0  ;;  %v4267_v42 = vld [vmem:[%s5240_s6 + $0x2c8] sm:$0xff]   ;;  %v1567_v20 = vrot.slane %v4959_v29, %v4556_v28  ;;  %v4294_v21 = vld [vmem:[%s5240_s6 + $0x350] sm:$0xff]  }
 0x9fa   :  { %3923 = vmatpush3.bf16.msra.mxu1 %v4224_v62  ;;  %3945 = vmatpush3.bf16.msra.mxu0 %v4225_v0  ;;  %v2152_v59 = vpack.c.bf16 %v2136_v50, %v2120_v55  ;;  %v4247_v62 = vld [vmem:[%s5240_s6 + $0x2f0] sm:$0xff]   ;;  %v2154_v0 = vpack.c.bf16 %v2138_v52, %v2122_v57  ;;  %v2021_v9 = vadd.f32 %v4941_v13, %v1567_v20  ;;  %v2135_v13 = vmax.f32 %v1978_v44, 0.0  ;;  %v4298_v44 = vld [vmem:[%s5240_s6 + $0x348] sm:$0xff]  }
 0x9fb   :  { %3924 = vmatprep.subr.bf16.mxu1 %v4226_v1  ;;  %3946 = vmatprep.subr.bf16.mxu0 %v4227_v2  ;;  %v4248_v1 = vld [vmem:[%s5240_s6 + $0x230] sm:$0xff]   ;;  %v2017_v51 = vadd.f32 %v4913_v63, %v1567_v20 }
 0x9fc   :  { %v4249_v2 = vld [vmem:[%s5240_s6 + $0x2b0] sm:$0xff]   ;;  %v2137_v55 = vmax.f32 %v2021_v9, 0.0 }
 0x9fd   :  { %v4295_v20 = vld [vmem:[%s5240_s6 + $0x3d0] sm:$0xff]  }
 0x9fe   :  { %3925 = vmatpush3.bf16.msra.mxu1 %v4228_v4  ;;  %3947 = vmatpush3.bf16.msra.mxu0 %v4229_v6  ;;  %v4251_v4 = vld [vmem:[%s5240_s6 + $0x2e8] sm:$0xff]  }
 0x9ff   :  { %3926 = vmatprep.subr.bf16.mxu1 %v4230_v7  ;;  %3948 = vmatprep.subr.bf16.mxu0 %v4231_v60  ;;  %v4253_v6 = vld [vmem:[%s5240_s6 + $0x2a8] sm:$0xff]   ;;  %v4254_v7 = vld [vmem:[%s5240_s6 + $0x260] sm:$0xff]  }
 0xa00   :  { %v4255_v60 = vld [vmem:[%s5240_s6 + $0x2e0] sm:$0xff]  }
 0xa02   :  { %3927 = vmatpush3.bf16.msra.mxu1 %v4232_v12  ;;  %3949 = vmatpush3.bf16.msra.mxu0 %v4233_v17  ;;  %v5029_v12 = vpop.f32.mrf.mxu1  ;;  %v4256_v17 = vld [vmem:[%s5240_s6 + $0x220] sm:$0xff]  }
 0xa03   :  { %3928 = vmatprep.subr.bf16.mxu1 %v4234_v18  ;;  %3950 = vmatprep.subr.bf16.mxu0 %v4235_v19  ;;  %v5034_v18 = vpop.f32.mrf.mxu0  ;;  %v4257_v19 = vld [vmem:[%s5240_s6 + $0x2a0] sm:$0xff]  }
 0xa04   :  { %v2061_v30 = vpop.f32.mrf.mxu1 }
 0xa05   :  { %v2104_v33 = vpop.f32.mrf.mxu0 }
 0xa06   :  { %3929 = vmatpush3.bf16.msra.mxu1 %v4236_v31  ;;  %3951 = vmatpush3.bf16.msra.mxu0 %v4237_v49  ;;  %v4260_v31 = vld [vmem:[%s5240_s6 + $0x218] sm:$0xff]   ;;  %v4263_v49 = vld [vmem:[%s5240_s6 + $0x2d0] sm:$0xff]  }
 0xa07   :  { %3930 = vmatprep.subr.bf16.mxu1 %v4238_v37  ;;  %3952 = vmatprep.subr.bf16.mxu0 %v4239_v27  ;;  %v5057_v37 = vpop.f32.mrf.mxu1  ;;  %v5062_v41 = vpop.f32.mrf.mxu0  ;;  %v4265_v27 = vld [vmem:[%s5240_s6 + $0x290] sm:$0xff]  }
 0xa0a   :  { %3931 = vmatpush3.bf16.msra.mxu1 %v4240_v43  ;;  %3953 = vmatpush3.bf16.msra.mxu0 %v4241_v45  ;;  %v2065_v43 = vpop.f32.mrf.mxu1  ;;  %v1579_v45 = vrot.slane %v4959_v29, %v4472_v34 }
 0xa0b   :  { %3960 = vmatprep.subr.bf16.mxu1 %v4242_v8  ;;  %3982 = vmatprep.subr.bf16.mxu0 %v4243_v47  ;;  %v2108_v8 = vpop.f32.mrf.mxu0  ;;  %v1587_v47 = vrot.slane %v4959_v29, %v4602_v10  ;;  %v4273_v10 = vld [vmem:[%s5240_s6 + $0x280] sm:$0xff]  }
 0xa0c   :  { %v2066_v50 = vadd.f32 %v2065_v43, %v1579_v45  ;;  %v4296_v43 = vld [vmem:[%s5240_s6 + $0x310] sm:$0xff]  }
 0xa0d   :  { %3302 = vmatmul.mubr.bf16.vlgmr.msra.gmra.mxu1 %v2147_v54  ;;  %3343 = vmatmul.mubr.bf16.vlgmr.msra.gmra.mxu0 %v2149_v56  ;;  %v2109_v52 = vadd.f32 %v2108_v8, %v1587_v47  ;;  %v2062_v54 = vadd.f32 %v2061_v30, %v1579_v45  ;;  %v2105_v63 = vadd.f32 %v2104_v33, %v1587_v47  ;;  %v2119_v56 = vmax.f32 %v1974_v48, 0.0  ;;  %v4284_v30 = vld [vmem:[%s5240_s6 + $0x328] sm:$0xff]   ;;  %v4286_v33 = vld [vmem:[%s5240_s6 + $0x360] sm:$0xff]  }
 0xa0e   :  { %3961 = vmatpush3.bf16.msra.mxu1 %v4244_v53  ;;  %3383 = vmatprep.mubr.bf16.mxu1 %v2152_v59  ;;  %v4272_v53 = vld [vmem:[%s5240_s6 + $0x200] sm:$0xff]   ;;  %v2140_v57 = vmax.f32 %v2066_v50, 0.0  ;;  %v4299_v45 = vld [vmem:[%s5240_s6 + $0x3c8] sm:$0xff]   ;;  %v1575_v8 = vrot.slane %v4959_v29, %v4553_v23 }
 0xa0f   :  { %3983 = vmatpush3.bf16.msra.mxu0 %v4245_v25  ;;  %3424 = vmatprep.mubr.bf16.mxu0 %v2154_v0  ;;  %v4275_v25 = vld [vmem:[%s5240_s6 + $0x3f8] sm:$0xff]   ;;  %v2142_v59 = vmax.f32 %v2109_v52, 0.0  ;;  %v2151_v0 = vpack.c.bf16 %v2135_v13, %v2119_v56  ;;  %v4301_v47 = vld [vmem:[%s5240_s6 + $0x388] sm:$0xff]  }
 0xa10   :  { %3962 = vmatprep.subr.bf16.mxu1 %v4246_v58  ;;  %3984 = vmatprep.subr.bf16.mxu0 %v4247_v62  ;;  %v2121_v58 = vmax.f32 %v2017_v51, 0.0  ;;  %v4276_v62 = vld [vmem:[%s5240_s6 + $0x338] sm:$0xff]   ;;  %v2064_v9 = vadd.f32 %v5057_v37, %v1575_v8  ;;  %v2060_v50 = vadd.f32 %v5029_v12, %v1575_v8  ;;  %v4304_v51 = vld [vmem:[%s5240_s6 + $0x300] sm:$0xff]  }
 0xa12   :  { %3963 = vmatpush3.bf16.msra.mxu1 %v4248_v1  ;;  %v2124_v1 = vmax.f32 %v2062_v54, 0.0  ;;  %v2139_v52 = vmax.f32 %v2064_v9, 0.0  ;;  %v2123_v13 = vmax.f32 %v2060_v50, 0.0 }
 0xa13   :  { %3985 = vmatpush3.bf16.msra.mxu0 %v4249_v2  ;;  %3964 = vmatprep.subr.bf16.mxu1 %v4250_v3  ;;  %v4277_v2 = vld [vmem:[%s5240_s6 + $0x3b8] sm:$0xff]   ;;  %v2153_v3 = vpack.c.bf16 %v2137_v55, %v2121_v58 }
 0xa14   :  { %3986 = vmatprep.subr.bf16.mxu0 %v4251_v4  ;;  %v2126_v4 = vmax.f32 %v2105_v63, 0.0  ;;  %v2155_v12 = vpack.c.bf16 %v2139_v52, %v2123_v13 }
 0xa16   :  { %3965 = vmatpush3.bf16.msra.mxu1 %v4252_v5  ;;  %v4278_v5 = vld [vmem:[%s5240_s6 + $0x370] sm:$0xff]  }
 0xa17   :  { %3987 = vmatpush3.bf16.msra.mxu0 %v4253_v6  ;;  %3966 = vmatprep.subr.bf16.mxu1 %v4254_v7  ;;  %v2156_v6 = vpack.c.bf16 %v2140_v57, %v2124_v1  ;;  %v4279_v7 = vld [vmem:[%s5240_s6 + $0x3f0] sm:$0xff]  }
 0xa18   :  { %3988 = vmatprep.subr.bf16.mxu0 %v4255_v60  ;;  %v2158_v60 = vpack.c.bf16 %v2142_v59, %v2126_v4 }
 0xa1a   :  { %3967 = vmatpush3.bf16.msra.mxu1 %v4256_v17  ;;  %v4280_v17 = vld [vmem:[%s5240_s6 + $0x330] sm:$0xff]  }
 0xa1b   :  { %3989 = vmatpush3.bf16.msra.mxu0 %v4257_v19  ;;  %3968 = vmatprep.subr.bf16.mxu1 %v4258_v22  ;;  %v4281_v19 = vld [vmem:[%s5240_s6 + $0x3b0] sm:$0xff]   ;;  %v4282_v22 = vld [vmem:[%s5240_s6 + $0x368] sm:$0xff]  }
 0xa1c   :  { %3990 = vmatprep.subr.bf16.mxu0 %v4259_v24  ;;  %v4283_v24 = vld [vmem:[%s5240_s6 + $0x3e8] sm:$0xff]  }
 0xa1e   :  { %3969 = vmatpush3.bf16.msra.mxu1 %v4260_v31  ;;  %v4285_v31 = vld [vmem:[%s5240_s6 + $0x3a8] sm:$0xff]  }
 0xa1f   :  { %3991 = vmatpush3.bf16.msra.mxu0 %v4261_v36  ;;  %3970 = vmatprep.subr.bf16.mxu1 %v4262_v16  ;;  %v4287_v36 = vld [vmem:[%s5240_s6 + $0x3e0] sm:$0xff]  }
 0xa20   :  { %3992 = vmatprep.subr.bf16.mxu0 %v4263_v49  ;;  %v4288_v16 = vld [vmem:[%s5240_s6 + $0x320] sm:$0xff]  }
 0xa21   :  { %v4289_v49 = vld [vmem:[%s5240_s6 + $0x3a0] sm:$0xff]  }
 0xa22   :  { %3971 = vmatpush3.bf16.msra.mxu1 %v4264_v40  ;;  %v4290_v40 = vld [vmem:[%s5240_s6 + $0x358] sm:$0xff]  }
 0xa23   :  { %3993 = vmatpush3.bf16.msra.mxu0 %v4265_v27  ;;  %3972 = vmatprep.subr.bf16.mxu1 %v4266_v38  ;;  %v4291_v27 = vld [vmem:[%s5240_s6 + $0x3d8] sm:$0xff]  }
 0xa24   :  { %3994 = vmatprep.subr.bf16.mxu0 %v4267_v42  ;;  %v4292_v38 = vld [vmem:[%s5240_s6 + $0x318] sm:$0xff]  }
 0xa25   :  { %v4293_v42 = vld [vmem:[%s5240_s6 + $0x398] sm:$0xff]  }
 0xa26   :  { %3973 = vmatpush3.bf16.msra.mxu1 %v4268_v39  ;;  %v4297_v39 = vld [vmem:[%s5240_s6 + $0x390] sm:$0xff]  }
 0xa27   :  { %3995 = vmatpush3.bf16.msra.mxu0 %v4269_v15  ;;  %3974 = vmatprep.subr.bf16.mxu1 %v4270_v46  ;;  %v1583_v15 = vrot.slane %v4959_v29, %v4563_v35  ;;  %v4300_v46 = vld [vmem:[%s5240_s6 + $0x308] sm:$0xff]   ;;  %v4303_v29 = vld [vmem:[%s5240_s6 + $0x3c0] sm:$0xff]  }
 0xa28   :  { %3996 = vmatprep.subr.bf16.mxu0 %v4271_v11  ;;  %v4302_v11 = vld [vmem:[%s5240_s6 + $0x340] sm:$0xff]  }
 0xa29   :  { %v2107_v48 = vadd.f32 %v5062_v41, %v1583_v15  ;;  %v2103_v37 = vadd.f32 %v5034_v18, %v1583_v15  ;;  %v4305_v41 = vld [vmem:[%s5240_s6 + $0x380] sm:$0xff]  }
 0xa2a   :  { %3975 = vmatpush3.bf16.msra.mxu1 %v4272_v53 }
 0xa2b   :  { %3997 = vmatpush3.bf16.msra.mxu0 %v4273_v10  ;;  %4004 = vmatprep.subr.bf16.mxu1 %v4274_v61  ;;  %v2141_v53 = vmax.f32 %v2107_v48, 0.0  ;;  %v2125_v54 = vmax.f32 %v2103_v37, 0.0 }
 0xa2c   :  { %4026 = vmatprep.subr.bf16.mxu0 %v4275_v25 }
 0xa2d   :  { %3384 = vmatmul.mubr.bf16.vlgmr.msra.gmra.mxu1 %v2151_v0  ;;  %v2157_v18 = vpack.c.bf16 %v2141_v53, %v2125_v54 }
 0xa2e   :  { %3425 = vmatmul.mubr.bf16.vlgmr.msra.gmra.mxu0 %v2153_v3  ;;  %4005 = vmatpush3.bf16.msra.mxu1 %v4276_v62 }
 0xa2f   :  { %3465 = vmatprep.mubr.bf16.mxu1 %v2156_v6  ;;  %4027 = vmatpush3.bf16.msra.mxu0 %v4277_v2 }
 0xa30   :  { %3506 = vmatprep.mubr.bf16.mxu0 %v2158_v60  ;;  %4006 = vmatprep.subr.bf16.mxu1 %v4278_v5  ;;  %v5210_v5 = vld [vmem:[%s5237_s7 + $0x8] sm:$0xff] }
 0xa31   :  { %4028 = vmatprep.subr.bf16.mxu0 %v4279_v7  ;;  %v2418_v6 = vrot.slane %v5210_v5, %v4556_v28 }
 0xa32   :  { %4007 = vmatpush3.bf16.msra.mxu1 %v4280_v17 }
 0xa33   :  { %4029 = vmatpush3.bf16.msra.mxu0 %v4281_v19  ;;  %4008 = vmatprep.subr.bf16.mxu1 %v4282_v22 }
 0xa34   :  { %4030 = vmatprep.subr.bf16.mxu0 %v4283_v24 }
 0xa36   :  { %4009 = vmatpush3.bf16.msra.mxu1 %v4284_v30 }
 0xa37   :  { %4031 = vmatpush3.bf16.msra.mxu0 %v4285_v31  ;;  %4010 = vmatprep.subr.bf16.mxu1 %v4286_v33 }
 0xa38   :  { %4032 = vmatprep.subr.bf16.mxu0 %v4287_v36 }
 0xa3a   :  { %4011 = vmatpush3.bf16.msra.mxu1 %v4288_v16 }
 0xa3b   :  { %4033 = vmatpush3.bf16.msra.mxu0 %v4289_v49  ;;  %4012 = vmatprep.subr.bf16.mxu1 %v4290_v40 }
 0xa3c   :  { %4034 = vmatprep.subr.bf16.mxu0 %v4291_v27 }
 0xa3e   :  { %4013 = vmatpush3.bf16.msra.mxu1 %v4292_v38 }
 0xa3f   :  { %4035 = vmatpush3.bf16.msra.mxu0 %v4293_v42  ;;  %4014 = vmatprep.subr.bf16.mxu1 %v4294_v21 }
 0xa40   :  { %4036 = vmatprep.subr.bf16.mxu0 %v4295_v20 }
 0xa42   :  { %4015 = vmatpush3.bf16.msra.mxu1 %v4296_v43 }
 0xa43   :  { %4037 = vmatpush3.bf16.msra.mxu0 %v4297_v39  ;;  %4016 = vmatprep.subr.bf16.mxu1 %v4298_v44 }
 0xa44   :  { %4038 = vmatprep.subr.bf16.mxu0 %v4299_v45 }
 0xa46   :  { %4017 = vmatpush3.bf16.msra.mxu1 %v4300_v46 }
 0xa47   :  { %4039 = vmatpush3.bf16.msra.mxu0 %v4301_v47  ;;  %4018 = vmatprep.subr.bf16.mxu1 %v4302_v11 }
 0xa48   :  { %4040 = vmatprep.subr.bf16.mxu0 %v4303_v29 }
 0xa4a   :  { %4019 = vmatpush3.bf16.msra.mxu1 %v4304_v51 }
 0xa4b   :  { %4041 = vmatpush3.bf16.msra.mxu0 %v4305_v41 }
 0xa4d   :  { %3466 = vmatmul.mubr.bf16.vlgmr.msra.gmra.mxu1 %v2155_v12 }
 0xa4e   :  { %3507 = vmatmul.mubr.bf16.vlgmr.msra.gmra.mxu0 %v2157_v18 }
 0xaad   :  { %v3888_v10 = vpop.f32.mrf.mxu1  ;;  %v3910_v61 = vpop.f32.mrf.mxu0 }
 0xaaf   :  { %v3889_v55 = vpop.f32.mrf.mxu1  ;;  %v3911_v63 = vpop.f32.mrf.mxu0 }
 0xab0   :  { %v3890_v7 = vadd.f32 %v3889_v55, %v3888_v10  ;;  %v3912_v31 = vadd.f32 %v3911_v63, %v3910_v61 }
 0xab1   :  { %v3891_v25 = vpop.f32.mrf.mxu1  ;;  %v3913_v56 = vpop.f32.mrf.mxu0 }
 0xab2   :  { %v3222_v19 = vadd.f32 %v3890_v7, %v2418_v6 }
 0xab3   :  { %v3892_v57 = vpop.f32.mrf.mxu1  ;;  %v3914_v59 = vpop.f32.mrf.mxu0 }
 0xab4   :  { %v3893_v22 = vadd.f32 %v3892_v57, %v3891_v25  ;;  %v3263_v36 = vadd.f32 %v3912_v31, %v3222_v19  ;;  %v3915_v27 = vadd.f32 %v3914_v59, %v3913_v56 }
 0xab6   :  { %v3225_v16 = vadd.f32 %v3893_v22, %v2418_v6 }
 0xab8   :  { %v3266_v21 = vadd.f32 %v3915_v27, %v3225_v16  ;;  %v3546_v16 = vrot.slane %v5210_v5, %v4464_v26  ;;  %v3552_v27 = vrot.slane %v5210_v5, %v4553_v23  ;;  %v3577_v23 = vrot.slane %v5210_v5, %v4563_v35 }
 0xacd   :  { %v3932_v58 = vpop.f32.mrf.mxu1  ;;  %v3954_v62 = vpop.f32.mrf.mxu0 }
 0xacf   :  { %v3933_v0 = vpop.f32.mrf.mxu1  ;;  %v3955_v1 = vpop.f32.mrf.mxu0 }
 0xad0   :  { %v3934_v33 = vadd.f32 %v3933_v0, %v3932_v58  ;;  %v3956_v20 = vadd.f32 %v3955_v1, %v3954_v62 }
 0xad1   :  { %v3935_v2 = vpop.f32.mrf.mxu1  ;;  %v3957_v3 = vpop.f32.mrf.mxu0 }
 0xad2   :  { %v3304_v38 = vadd.f32 %v3934_v33, %v3263_v36 }
 0xad3   :  { %v3936_v4 = vpop.f32.mrf.mxu1  ;;  %v3958_v17 = vpop.f32.mrf.mxu0 }
 0xad4   :  { %v3937_v42 = vadd.f32 %v3936_v4, %v3935_v2  ;;  %v3345_v44 = vadd.f32 %v3956_v20, %v3304_v38  ;;  %v3959_v8 = vadd.f32 %v3958_v17, %v3957_v3 }
 0xad6   :  { %v3307_v45 = vadd.f32 %v3937_v42, %v3266_v21  ;;  %v3558_v42 = vrot.slane %v5210_v5, %v4472_v34 }
 0xad8   :  { %v3348_v11 = vadd.f32 %v3959_v8, %v3307_v45 }
 0xaed   :  { %v3976_v60 = vpop.f32.mrf.mxu1 }
 0xaee   :  { %v3998_v24 = vpop.f32.mrf.mxu0 }
 0xaef   :  { %v3977_v30 = vpop.f32.mrf.mxu1 }
 0xaf0   :  { %v3999_v49 = vpop.f32.mrf.mxu0  ;;  %v3978_v43 = vadd.f32 %v3977_v30, %v3976_v60 }
 0xaf1   :  { %v3979_v40 = vpop.f32.mrf.mxu1  ;;  %v4000_v48 = vadd.f32 %v3999_v49, %v3998_v24 }
 0xaf2   :  { %v4001_v28 = vpop.f32.mrf.mxu0  ;;  %v3386_v15 = vadd.f32 %v3978_v43, %v3345_v44 }
 0xaf3   :  { %v3980_v39 = vpop.f32.mrf.mxu1 }
 0xaf4   :  { %v3981_v46 = vadd.f32 %v3980_v39, %v3979_v40  ;;  %v4002_v9 = vpop.f32.mrf.mxu0  ;;  %v3427_v37 = vadd.f32 %v4000_v48, %v3386_v15 }
 0xaf5   :  { %v4003_v13 = vadd.f32 %v4002_v9, %v4001_v28 }
 0xaf6   :  { %v3389_v51 = vadd.f32 %v3981_v46, %v3348_v11 }
 0xaf8   :  { %v3430_v61 = vadd.f32 %v4003_v13, %v3389_v51 }
 0xb0d   :  { %v4020_v47 = vpop.f32.mrf.mxu1 }
 0xb0e   :  { %v4042_v29 = vpop.f32.mrf.mxu0 }
 0xb0f   :  { %v4021_v50 = vpop.f32.mrf.mxu1 }
 0xb10   :  { %v4022_v52 = vadd.f32 %v4021_v50, %v4020_v47  ;;  %v4043_v41 = vpop.f32.mrf.mxu0 }
 0xb11   :  { %v4023_v53 = vpop.f32.mrf.mxu1  ;;  %v4044_v12 = vadd.f32 %v4043_v41, %v4042_v29 }
 0xb12   :  { %v3468_v54 = vadd.f32 %v4022_v52, %v3427_v37  ;;  %v4045_v18 = vpop.f32.mrf.mxu0 }
 0xb13   :  { %v4024_v10 = vpop.f32.mrf.mxu1 }
 0xb14   :  { %v3509_v55 = vadd.f32 %v4044_v12, %v3468_v54  ;;  %v4025_v63 = vadd.f32 %v4024_v10, %v4023_v53  ;;  %v4046_v25 = vpop.f32.mrf.mxu0 }
 0xb15   :  { %v4047_v57 = vadd.f32 %v4046_v25, %v4045_v18 }
 0xb16   :  { %v3471_v56 = vadd.f32 %v4025_v63, %v3430_v61  ;;  %v3515_v58 = vadd.f32 %v3509_v55, %v4669_v14 }
 0xb18   :  { %v3512_v59 = vadd.f32 %v4047_v57, %v3471_v56  ;;  %v3517_v62 = vsel %vm130_vm1, %v3515_v58, 0.0 }
 0xb19   :  { %3518 = vadd.xlane.f32.xlu1 %v3517_v62 }
 0xb1a   :  { %v3516_v0 = vadd.f32 %v3512_v59, %v4667_v32 }
 0xb1c   :  { %v3520_v1 = vsel %vm130_vm1, %v3516_v0, 0.0 }
 0xb1d   :  { %3521 = vadd.xlane.f32.xlu0 %v3520_v1 }
 0xba2   :  { %v3519_v2 = vpop.xlane.xlu1 %3518 }
 0xba3   :  { %v3523_v3 = vmul.f32 0.03125, %v3519_v2 }
 0xba5   :  { %v3525_v4 = vsub.f32 %v3515_v58, %v3523_v3 }
 0xba6   :  { %v3522_v6 = vpop.xlane.xlu0 %3521 }
 0xba7   :  { %v3524_v7 = vmul.f32 0.03125, %v3522_v6  ;;  %v3527_v60 = vmul.f32 %v3525_v4, %v3525_v4 }
 0xba9   :  { %v3526_v17 = vsub.f32 %v3516_v0, %v3524_v7  ;;  %v3529_v19 = vsel %vm130_vm1, %v3527_v60, 0.0 }
 0xbaa   :  { %3530 = vadd.xlane.f32.xlu1 %v3529_v19 }
 0xbab   :  { %v3528_v14 = vmul.f32 %v3526_v17, %v3526_v17 }
 0xbad   :  { %v3532_v22 = vsel %vm130_vm1, %v3528_v14, 0.0 }
 0xbae   :  { %3533 = vadd.xlane.f32.xlu0 %v3532_v22 }
 0xc33   :  { %v3531_v24 = vpop.xlane.xlu1 %3530 }
 0xc34   :  { %v3535_v30 = vmul.f32 0.03125, %v3531_v24 }
 0xc36   :  { %v3537_v32 = vadd.f32 1e-05, %v3535_v30 }
 0xc37   :  { %v3534_v31 = vpop.xlane.xlu0 %3533 }
 0xc38   :  { %4326 = vrsqrt.f32 %v3537_v32  ;;  %v3536_v33 = vmul.f32 0.03125, %v3534_v31 }
 0xc3a   :  { %v3538_v36 = vadd.f32 1e-05, %v3536_v33 }
 0xc3c   :  { %4328 = vrsqrt.f32 %v3538_v36 }
 0xc45   :  { %v4327_v49 = vpop.eup %4326 }
 0xc46   :  { %v3541_v40 = vmul.f32 %v4327_v49, %v3525_v4 }
 0xc48   :  { %v3547_v38 = vmul.f32 %v3546_v16, %v3541_v40 }
 0xc49   :  { %v4329_v21 = vpop.eup %4328 }
 0xc4a   :  { %v3553_v20 = vadd.f32 %v3552_v27, %v3547_v38  ;;  %v3542_v43 = vmul.f32 %v4329_v21, %v3526_v17 }
 0xc4c   :  { %v3559_v28 = vmul.f32 %v3558_v42, %v3553_v20  ;;  %v3548_v39 = vmul.f32 %v3546_v16, %v3542_v43 }
 0xc4e   :  { %v3567_v44 = vsel %vm3566_vm4, %v3559_v28, 0.0  ;;  %v3554_v45 = vadd.f32 %v3552_v27, %v3548_v39 }
 0xc4f   :  { %3568 = vadd.xlane.f32.xlu0 %v3567_v44 }
 0xc50   :  { %v3560_v8 = vmul.f32 %v3558_v42, %v3554_v45 }
 0xc52   :  { %v3563_v26 = vrot.slane %v3560_v8, 7 }
 0xc54   :  { %v3571_v15 = vsel %vm3570_vm5, %v3563_v26, 0.0 }
 0xc55   :  { %3572 = vadd.xlane.f32.xlu1 %v3571_v15 }
 0xcd8   :  { %v3569_v46 = vpop.xlane.xlu0 %3568 }
 0xcd9   :  { %v3578_v34 = vadd.f32 %v3577_v23, %v3569_v46 }
 0xcdb   :  { %3581 = vst.msk [vmem:[%s5242_s8 - $0x7] sm:$0x80] %vm3580_vm6, %v3578_v34 }
 0xcde   :  { %v3573_v9 = vpop.xlane.xlu1 %3572 }
 0xcdf   :  { %v3579_v47 = vadd.f32 %v3577_v23, %v3573_v9 }
 0xce1   :  { %3583 = vst.msk [vmem:[%s5242_s8 + $0x1] sm:$0x1] %vm3582_vm7, %v3579_v47 }

</bundles_post_ra>
